<compile_context>
chip_gen: v6e
topology: v6e:2x2x1
jax: 0.10.0
libtpu: 0.0.40
codegen_flags: <defaults>
</compile_context>

<pallas_src>
import functools

import jax
import jax.numpy as jnp
from jax.experimental import pallas as pl
from jax.experimental.pallas import tpu as pltpu


CLASS_PAD = 128   # lane-dense padded class dimension
MAX_TM = 512      # batch tile (multiple of 8); larger tiles amortize per-step overhead


def _round_up(x, m):
    return ((x + m - 1) // m) * m


def _mlp_kernel(x_ref,
                w1_ref, b1_ref,
                w2_ref, b2_ref,
                w3_ref, b3_ref,
                o_ref):
    # Layer 1: Linear(1536 -> 512) with BN pre-folded into w1/b1, then ReLU.
    x = x_ref[...].astype(jnp.bfloat16)
    h1 = jnp.dot(x, w1_ref[...], preferred_element_type=jnp.float32) + b1_ref[...]
    h1 = jnp.maximum(h1, 0.0)
    # Dropout(0.5): identity in eval mode.

    # Layer 2: Linear(512 -> 256) with BN pre-folded, then ReLU.
    h2 = jnp.dot(h1.astype(jnp.bfloat16), w2_ref[...],
                 preferred_element_type=jnp.float32) + b2_ref[...]
    h2 = jnp.maximum(h2, 0.0)
    # Dropout(0.3): identity in eval mode.

    # Layer 3: Linear(256 -> 128 padded classes); lane-dense store.
    o_ref[...] = (jnp.dot(h2.astype(jnp.bfloat16), w3_ref[...],
                          preferred_element_type=jnp.float32)
                  + b3_ref[...]).astype(o_ref.dtype)


def prepare_params(raw_params, class_pad=CLASS_PAD, eps=1e-5):
    """Fold eval-mode BatchNorm into the Linear layers, cast weights to bf16,
    and pad the final class dimension to `class_pad` lanes."""
    (w1, b1, g1, be1, m1, v1,
     w2, b2, g2, be2, m2, v2,
     w3, b3) = raw_params

    s1 = g1 / jnp.sqrt(v1 + eps)
    t1 = be1 - m1 * s1
    s2 = g2 / jnp.sqrt(v2 + eps)
    t2 = be2 - m2 * s2

    w1f = (w1 * s1).astype(jnp.bfloat16)          # column scale (s1 is (1, 512))
    b1f = (b1 * s1 + t1).astype(jnp.float32)
    w2f = (w2 * s2).astype(jnp.bfloat16)
    b2f = (b2 * s2 + t2).astype(jnp.float32)

    num_classes = w3.shape[1]
    pad = class_pad - num_classes
    w3p = jnp.pad(w3, ((0, 0), (0, pad))).astype(jnp.bfloat16)
    b3p = jnp.pad(b3, ((0, 0), (0, pad))).astype(jnp.float32)

    return (w1f, b1f, w2f, b2f, w3p, b3p), num_classes


@functools.partial(jax.jit, static_argnames=("num_classes",))
def pneumonia_model_forward(x, folded_params, num_classes=4):
    """x: [B, input_features] float32.  Returns [B, num_classes] float32."""
    (w1, b1, w2, b2, w3, b3) = folded_params
    B, F = x.shape
    H1 = w1.shape[1]
    H2 = w2.shape[1]
    Cp = w3.shape[1]

    # Batch tile: multiple of 8, capped at MAX_TM; pad B up so the grid is exact.
    tm = min(MAX_TM, _round_up(B, 8))
    b_pad = _round_up(B, tm)
    if b_pad != B:
        x = jnp.pad(x, ((0, b_pad - B), (0, 0)))
    grid = (b_pad // tm,)

    # Resident operands (weights/biases): constant index_map -> DMA'd once,
    # kept in VMEM across all batch tiles.
    resident = lambda shape: pl.BlockSpec(shape, lambda i: (0, 0))

    flops = 2 * b_pad * (F * H1 + H1 * H2 + H2 * Cp)
    bytes_accessed = (b_pad * F * 4 + b_pad * Cp * 4
                      + (w1.size + w2.size + w3.size) * 2
                      + (b1.size + b2.size + b3.size) * 4)

    out = pl.pallas_call(
        _mlp_kernel,
        out_shape=jax.ShapeDtypeStruct((b_pad, Cp), jnp.float32),
        grid=grid,
        in_specs=[
            pl.BlockSpec((tm, F), lambda i: (i, 0)),   # x: tiled over batch
            resident((F, H1)), resident((1, H1)),
            resident((H1, H2)), resident((1, H2)),
            resident((H2, Cp)), resident((1, Cp)),
        ],
        out_specs=pl.BlockSpec((tm, Cp), lambda i: (i, 0)),
        compiler_params=pltpu.CompilerParams(
            dimension_semantics=("parallel",),
            vmem_limit_bytes=32 * 1024 * 1024,
        ),
        cost_estimate=pl.CostEstimate(
            flops=flops, transcendentals=0, bytes_accessed=bytes_accessed),
    )(x, w1, b1, w2, b2, w3, b3)

    return out[:B, :num_classes]


def make_raw_params(key, input_features=1536, num_classes=4):
    """Deterministic synthetic parameters matching the PyTorch module shapes."""
    ks = jax.random.split(key, 16)

    def linear(kw, kb, fan_in, fan_out):
        bound = 1.0 / jnp.sqrt(fan_in)
        w = jax.random.uniform(kw, (fan_in, fan_out), jnp.float32, -bound, bound)
        b = jax.random.uniform(kb, (1, fan_out), jnp.float32, -bound, bound)
        return w, b

    def batchnorm(kg, kb, km, kv, n):
        gamma = 1.0 + 0.1 * jax.random.normal(kg, (1, n), jnp.float32)
        beta = 0.1 * jax.random.normal(kb, (1, n), jnp.float32)
        run_mean = 0.1 * jax.random.normal(km, (1, n), jnp.float32)
        run_var = jnp.abs(1.0 + 0.1 * jax.random.normal(kv, (1, n), jnp.float32))
        return gamma, beta, run_mean, run_var

    w1, b1 = linear(ks[0], ks[1], input_features, 512)
    g1, be1, m1, v1 = batchnorm(ks[2], ks[3], ks[4], ks[5], 512)
    w2, b2 = linear(ks[6], ks[7], 512, 256)
    g2, be2, m2, v2 = batchnorm(ks[8], ks[9], ks[10], ks[11], 256)
    w3, b3 = linear(ks[12], ks[13], 256, num_classes)
    return (w1, b1, g1, be1, m1, v1, w2, b2, g2, be2, m2, v2, w3, b3)


def _reference_forward(x, raw_params, eps=1e-5):
    """Pure-f32 eval-mode reference (BN applied explicitly, dropout = identity)."""
    (w1, b1, g1, be1, m1, v1,
     w2, b2, g2, be2, m2, v2,
     w3, b3) = raw_params
    h1 = x @ w1 + b1
    h1 = (h1 - m1) / jnp.sqrt(v1 + eps) * g1 + be1
    h1 = jnp.maximum(h1, 0.0)
    h2 = h1 @ w2 + b2
    h2 = (h2 - m2) / jnp.sqrt(v2 + eps) * g2 + be2
    h2 = jnp.maximum(h2, 0.0)
    return h2 @ w3 + b3


if __name__ == "__main__":
    key = jax.random.PRNGKey(0)
    k_x, k_p = jax.random.split(key)

    B, F, C = 8, 1536, 4
    x = jax.random.normal(k_x, (B, F), jnp.float32)
    raw_params = make_raw_params(k_p, input_features=F, num_classes=C)
    folded_params, num_classes = prepare_params(raw_params)

    out = pneumonia_model_forward(x, folded_params, num_classes=num_classes)
    out = jax.block_until_ready(out)

    ref = _reference_forward(x, raw_params)
    assert out.shape == (B, C), out.shape
    # bf16 weights -> looser tolerance than pure-f32.
    max_err = float(jnp.max(jnp.abs(out - ref)))
    assert jnp.allclose(out, ref, atol=5e-2, rtol=5e-2), max_err

    print("KERNEL_OK")
</pallas_src>

<mosaic_0001>
module attributes {stable_mosaic.version = 11 : i64} {
  func.func @_mlp_kernel(%arg0: i32, %arg1: memref<8x1536xf32, #tpu.memory_space<vmem>>, %arg2: memref<1536x512xbf16, #tpu.memory_space<vmem>>, %arg3: memref<1x512xf32, #tpu.memory_space<vmem>>, %arg4: memref<512x256xbf16, #tpu.memory_space<vmem>>, %arg5: memref<1x256xf32, #tpu.memory_space<vmem>>, %arg6: memref<256x128xbf16, #tpu.memory_space<vmem>>, %arg7: memref<1x128xf32, #tpu.memory_space<vmem>>, %arg8: memref<8x128xf32, #tpu.memory_space<vmem>>) attributes {dimension_semantics = [#tpu.dimension_semantics<parallel>], iteration_bounds = array<i64: 1>, scalar_prefetch = 0 : i64, scratch_operands = 0 : i64, tpu.core_type = #tpu.core_type<tc>, window_params = [{transform_indices = @transform_0, window_bounds = array<i64: 8, 1536>}, {pipeline_mode = #tpu.pipeline_mode<synchronous>, transform_indices = @transform_1, window_bounds = array<i64: 1536, 512>}, {pipeline_mode = #tpu.pipeline_mode<synchronous>, transform_indices = @transform_2, window_bounds = array<i64: 1, 512>}, {pipeline_mode = #tpu.pipeline_mode<synchronous>, transform_indices = @transform_3, window_bounds = array<i64: 512, 256>}, {pipeline_mode = #tpu.pipeline_mode<synchronous>, transform_indices = @transform_4, window_bounds = array<i64: 1, 256>}, {pipeline_mode = #tpu.pipeline_mode<synchronous>, transform_indices = @transform_5, window_bounds = array<i64: 256, 128>}, {pipeline_mode = #tpu.pipeline_mode<synchronous>, transform_indices = @transform_6, window_bounds = array<i64: 1, 128>}, {transform_indices = @transform_7, window_bounds = array<i64: 8, 128>}]} {
    %c0 = arith.constant 0 : index
    %c0_0 = arith.constant 0 : index
    %0 = vector.load %arg1[%c0, %c0_0] : memref<8x1536xf32, #tpu.memory_space<vmem>>, vector<8x1536xf32>
    %1 = arith.truncf %0 : vector<8x1536xf32> to vector<8x1536xbf16>
    %c0_1 = arith.constant 0 : index
    %c0_2 = arith.constant 0 : index
    %2 = vector.load %arg2[%c0_1, %c0_2] : memref<1536x512xbf16, #tpu.memory_space<vmem>>, vector<1536x512xbf16>
    %cst = arith.constant dense<0.000000e+00> : vector<8x512xf32>
    %3 = tpu.matmul %1, %2, %cst {dimension_numbers = #tpu.dot_dimension_numbers<[1], [0], [0], [1], [0, 0, 1, 1], [], []>} : vector<8x1536xbf16>, vector<1536x512xbf16>, vector<8x512xf32> -> vector<8x512xf32>
    %c0_3 = arith.constant 0 : index
    %c0_4 = arith.constant 0 : index
    %4 = vector.load %arg3[%c0_3, %c0_4] : memref<1x512xf32, #tpu.memory_space<vmem>>, vector<1x512xf32>
    %5 = vector.broadcast %4 : vector<1x512xf32> to vector<8x512xf32>
    %6 = arith.addf %3, %5 : vector<8x512xf32>
    %cst_5 = arith.constant 0.000000e+00 : f32
    %7 = vector.broadcast %cst_5 : f32 to vector<8x512xf32>
    %8 = arith.maximumf %6, %7 : vector<8x512xf32>
    %9 = arith.truncf %8 : vector<8x512xf32> to vector<8x512xbf16>
    %c0_6 = arith.constant 0 : index
    %c0_7 = arith.constant 0 : index
    %10 = vector.load %arg4[%c0_6, %c0_7] : memref<512x256xbf16, #tpu.memory_space<vmem>>, vector<512x256xbf16>
    %cst_8 = arith.constant dense<0.000000e+00> : vector<8x256xf32>
    %11 = tpu.matmul %9, %10, %cst_8 {dimension_numbers = #tpu.dot_dimension_numbers<[1], [0], [0], [1], [0, 0, 1, 1], [], []>} : vector<8x512xbf16>, vector<512x256xbf16>, vector<8x256xf32> -> vector<8x256xf32>
    %c0_9 = arith.constant 0 : index
    %c0_10 = arith.constant 0 : index
    %12 = vector.load %arg5[%c0_9, %c0_10] : memref<1x256xf32, #tpu.memory_space<vmem>>, vector<1x256xf32>
    %13 = vector.broadcast %12 : vector<1x256xf32> to vector<8x256xf32>
    %14 = arith.addf %11, %13 : vector<8x256xf32>
    %cst_11 = arith.constant 0.000000e+00 : f32
    %15 = vector.broadcast %cst_11 : f32 to vector<8x256xf32>
    %16 = arith.maximumf %14, %15 : vector<8x256xf32>
    %17 = arith.truncf %16 : vector<8x256xf32> to vector<8x256xbf16>
    %c0_12 = arith.constant 0 : index
    %c0_13 = arith.constant 0 : index
    %18 = vector.load %arg6[%c0_12, %c0_13] : memref<256x128xbf16, #tpu.memory_space<vmem>>, vector<256x128xbf16>
    %cst_14 = arith.constant dense<0.000000e+00> : vector<8x128xf32>
    %19 = tpu.matmul %17, %18, %cst_14 {dimension_numbers = #tpu.dot_dimension_numbers<[1], [0], [0], [1], [0, 0, 1, 1], [], []>} : vector<8x256xbf16>, vector<256x128xbf16>, vector<8x128xf32> -> vector<8x128xf32>
    %c0_15 = arith.constant 0 : index
    %c0_16 = arith.constant 0 : index
    %20 = vector.load %arg7[%c0_15, %c0_16] : memref<1x128xf32, #tpu.memory_space<vmem>>, vector<1x128xf32>
    %21 = vector.broadcast %20 : vector<1x128xf32> to vector<8x128xf32>
    %22 = arith.addf %19, %21 : vector<8x128xf32>
    %c0_17 = arith.constant 0 : index
    %c0_18 = arith.constant 0 : index
    %23 = vector.load %arg8[%c0_17, %c0_18] : memref<8x128xf32, #tpu.memory_space<vmem>>, vector<8x128xf32>
    tpu.vector_store %arg8[%c0_17, %c0_18], %22 {strides = array<i32>} : memref<8x128xf32, #tpu.memory_space<vmem>>, vector<8x128xf32>,
    return
  }
  func.func @transform_0(%arg0: i32) -> (i32, i32) {
    %c0_i32 = arith.constant 0 : i32
    %c0_i32_0 = arith.constant 0 : i32
    return %arg0, %c0_i32 : i32, i32
  }
  func.func @transform_1(%arg0: i32) -> (i32, i32) {
    %c0_i32 = arith.constant 0 : i32
    %c0_i32_0 = arith.constant 0 : i32
    %c0_i32_1 = arith.constant 0 : i32
    return %c0_i32, %c0_i32_0 : i32, i32
  }
  func.func @transform_2(%arg0: i32) -> (i32, i32) {
    %c0_i32 = arith.constant 0 : i32
    %c0_i32_0 = arith.constant 0 : i32
    %c0_i32_1 = arith.constant 0 : i32
    return %c0_i32, %c0_i32_0 : i32, i32
  }
  func.func @transform_3(%arg0: i32) -> (i32, i32) {
    %c0_i32 = arith.constant 0 : i32
    %c0_i32_0 = arith.constant 0 : i32
    %c0_i32_1 = arith.constant 0 : i32
    return %c0_i32, %c0_i32_0 : i32, i32
  }
  func.func @transform_4(%arg0: i32) -> (i32, i32) {
    %c0_i32 = arith.constant 0 : i32
    %c0_i32_0 = arith.constant 0 : i32
    %c0_i32_1 = arith.constant 0 : i32
    return %c0_i32, %c0_i32_0 : i32, i32
  }
  func.func @transform_5(%arg0: i32) -> (i32, i32) {
    %c0_i32 = arith.constant 0 : i32
    %c0_i32_0 = arith.constant 0 : i32
    %c0_i32_1 = arith.constant 0 : i32
    return %c0_i32, %c0_i32_0 : i32, i32
  }
  func.func @transform_6(%arg0: i32) -> (i32, i32) {
    %c0_i32 = arith.constant 0 : i32
    %c0_i32_0 = arith.constant 0 : i32
    %c0_i32_1 = arith.constant 0 : i32
    return %c0_i32, %c0_i32_0 : i32, i32
  }
  func.func @transform_7(%arg0: i32) -> (i32, i32) {
    %c0_i32 = arith.constant 0 : i32
    %c0_i32_0 = arith.constant 0 : i32
    return %arg0, %c0_i32 : i32, i32
  }
}

</mosaic_0001>

<bundles_post_ra>
// kernel: pneumonia_model_forward.1
= control target key start
LH: loop header
LB: loop body
LE: loop exit
PB: predicated region body
PF: predicated region fallthrough
CT: control target
= control target key end

     0   :  { %12 = vsyncpa [#allocation3], 0  ;;  %s5127_s0 = inlined_call_operand.hbm [shape: f32[8,1536], index: 0, kind: input, shape index: {}]   ;;  %s5128_s1 = inlined_call_operand.hbm [shape: bf16[1536,512], index: 1, kind: input, shape index: {}]   ;;  %s5129_s2 = inlined_call_operand.hbm [shape: f32[1,512], index: 2, kind: input, shape index: {}]   ;;  %s5130_s3 = inlined_call_operand.hbm [shape: bf16[512,256], index: 3, kind: input, shape index: {}]   ;;  %s5131_s4 = inlined_call_operand.hbm [shape: f32[1,256], index: 4, kind: input, shape index: {}]   ;;  %s5132_s5 = inlined_call_operand.hbm [shape: bf16[256,128], index: 5, kind: input, shape index: {}]   ;;  %s5133_s6 = inlined_call_operand.hbm [shape: f32[1,128], index: 6, kind: input, shape index: {}]   ;;  %s5134_s7 = inlined_call_operand.vmem [shape: f32[8,128], index: 7, kind: output, shape index: {}]  }
   0x1   :  { %13 = vsyncpa [#allocation5], 0 }
   0x2   :  { %14 = vsyncpa [#allocation8], 0 }
   0x3   :  { %15 = vsyncpa [#allocation11], 0  ;;  %s4967_s24 = smov [#allocation4]  }
   0x4   :  { %s31_s25 = sshll.u32 %s4967_s24, 4  ;;  %s32_s25 = int_to_ptr.vmem [resolvable:$true] %s31_s25 }
   0x5   :  { %s4827_s26 = scalar_lea.vmem %s32_s25, 49152  ;;  %p4832_p1 = scmp.lt.s32.totalorder %s32_s25, %s32_s25 }
   0x6   :  { %p4828_p0 = scmp.ne.s32.totalorder %s32_s25, %s4827_s26  ;;  %p4833_p2 = scmp.lt.s32.totalorder %s4827_s26, %s4827_s26 }
   0x8   :  { %p4834_p3 = por %p4833_p2, %p4832_p1 }
   0xa   :  { %p4835_p4 = pnand %p4834_p3, %p4828_p0 }
   0xc   :  { %4838 = shalt.err (!%p4835_p4)
}
   0xd   :  { %s4968_s27 = smov 256   ;;  %s4969_s28 = smov 16  }
   0xe   :  { %37 = dma.hbm_to_vmem [thread:$0]  %s5128_s1, 49152, %s32_s25, [#allocation5], %s4968_s27, %s4968_s27, %s4969_s28  }
   0xf   :  { %s4970_s8 = smov [#allocation7]  }
  0x10   :  { %s53_s9 = sshll.u32 %s4970_s8, 4  ;;  %s54_s9 = int_to_ptr.vmem [resolvable:$true] %s53_s9 }
  0x11   :  { %s4847_s10 = scalar_lea.vmem %s54_s9, 8192  ;;  %p4852_p6 = scmp.lt.s32.totalorder %s54_s9, %s54_s9 }
  0x12   :  { %p4848_p5 = scmp.ne.s32.totalorder %s54_s9, %s4847_s10  ;;  %p4853_p7 = scmp.lt.s32.totalorder %s4847_s10, %s4847_s10 }
  0x14   :  { %p4854_p8 = por %p4853_p7, %p4852_p6 }
  0x16   :  { %p4855_p9 = pnand %p4854_p8, %p4848_p5 }
  0x18   :  { %4858 = shalt.err (!%p4855_p9)
}
  0x19   :  { %s4971_s11 = smov 128   ;;  %s4972_s12 = smov 8  }
  0x1a   :  { %59 = dma.hbm_to_vmem [thread:$0]  %s5130_s3, 8192, %s54_s9, [#allocation8], %s4971_s11, %s4971_s11, %s4972_s12  }
  0x1b   :  { %s4973_s15 = smov [#allocation10]  }
  0x1c   :  { %s75_s16 = sshll.u32 %s4973_s15, 4  ;;  %s76_s16 = int_to_ptr.vmem [resolvable:$true] %s75_s16 }
  0x1d   :  { %s4867_s1 = scalar_lea.vmem %s76_s16, 2048  ;;  %p4872_p11 = scmp.lt.s32.totalorder %s76_s16, %s76_s16 }
  0x1e   :  { %p4868_p10 = scmp.ne.s32.totalorder %s76_s16, %s4867_s1  ;;  %p4873_p12 = scmp.lt.s32.totalorder %s4867_s1, %s4867_s1 }
  0x20   :  { %p4874_p13 = por %p4873_p12, %p4872_p11 }
  0x22   :  { %p4875_p0 = pnand %p4874_p13, %p4868_p10 }
  0x24   :  { %4878 = shalt.err (!%p4875_p0)
}
  0x25   :  { %s4974_s17 = smov 64   ;;  %s4975_s18 = smov 4  }
  0x26   :  { %81 = dma.hbm_to_vmem [thread:$0]  %s5132_s5, 2048, %s76_s16, [#allocation11], %s4974_s17, %s4974_s17, %s4975_s18  }
  0x27   :  { %s4976_s21 = smov [#allocation2]   ;;  %s4977_s3 = smov [#allocation6]  }
  0x28   :  { %s22_s22 = sshll.u32 %s4976_s21, 4  ;;  %s44_s23 = sshll.u32 %s4977_s3, 4  ;;  %s23_s22 = int_to_ptr.vmem [resolvable:$true] %s22_s22  ;;  %s45_s23 = int_to_ptr.vmem [resolvable:$true] %s44_s23 }
  0x29   :  { %s4887_s24 = scalar_lea.vmem %s23_s22, 1536  ;;  %p4892_p2 = scmp.lt.s32.totalorder %s23_s22, %s23_s22 }
  0x2a   :  { %p4888_p1 = scmp.ne.s32.totalorder %s23_s22, %s4887_s24  ;;  %p4893_p3 = scmp.lt.s32.totalorder %s4887_s24, %s4887_s24 }
  0x2c   :  { %p4894_p4 = por %p4893_p3, %p4892_p2 }
  0x2e   :  { %p4895_p5 = pnand %p4894_p4, %p4888_p1 }
  0x30   :  { %4898 = shalt.err (!%p4895_p5)
}
  0x31   :  { %25 = dma.hbm_to_vmem [thread:$0]  %s5127_s0, 1536, %s23_s22, [#allocation3]  }
  0x32   :  { %s4907_s27 = scalar_lea.vmem %s45_s23, 64  ;;  %p4912_p7 = scmp.lt.s32.totalorder %s45_s23, %s45_s23 }
  0x33   :  { %p4908_p6 = scmp.ne.s32.totalorder %s45_s23, %s4907_s27  ;;  %p4913_p8 = scmp.lt.s32.totalorder %s4907_s27, %s4907_s27 }
  0x35   :  { %p4914_p9 = por %p4913_p8, %p4912_p7 }
  0x37   :  { %p4915_p10 = pnand %p4914_p9, %p4908_p6 }
  0x39   :  { %4918 = shalt.err (!%p4915_p10)
}
  0x3a   :  { %47 = dma.hbm_to_vmem [thread:$0]  %s5129_s2, 64, %s45_s23, [#allocation5]  }
  0x3b   :  { %s4978_s29 = smov [#allocation9]   ;;  %s4979_s8 = smov [#allocation12]  }
  0x3c   :  { %s66_s30 = sshll.u32 %s4978_s29, 4  ;;  %s88_s9 = sshll.u32 %s4979_s8, 4  ;;  %s67_s30 = int_to_ptr.vmem [resolvable:$true] %s66_s30  ;;  %s89_s9 = int_to_ptr.vmem [resolvable:$true] %s88_s9 }
  0x3d   :  { %s4927_s10 = scalar_lea.vmem %s67_s30, 32  ;;  %p4932_p12 = scmp.lt.s32.totalorder %s67_s30, %s67_s30 }
  0x3e   :  { %p4928_p11 = scmp.ne.s32.totalorder %s67_s30, %s4927_s10  ;;  %p4933_p13 = scmp.lt.s32.totalorder %s4927_s10, %s4927_s10 }
  0x40   :  { %p4934_p0 = por %p4933_p13, %p4932_p12 }
  0x42   :  { %p4935_p1 = pnand %p4934_p0, %p4928_p11 }
  0x44   :  { %4938 = shalt.err (!%p4935_p1)
}
  0x45   :  { %69 = dma.hbm_to_vmem [thread:$0]  %s5131_s4, 32, %s67_s30, [#allocation8]  }
  0x46   :  { %s4947_s12 = scalar_lea.vmem %s89_s9, 16  ;;  %s4951_s2 = scalar_lea.vmem %s89_s9, 32 }
  0x47   :  { %p4948_p2 = scmp.ne.s32.totalorder %s89_s9, %s4947_s12  ;;  %p4952_p3 = scmp.lt.s32.totalorder %s89_s9, %s89_s9 }
  0x48   :  { %p4953_p4 = scmp.lt.s32.totalorder %s4951_s2, %s4947_s12 }
  0x4a   :  { %p4954_p5 = por %p4953_p4, %p4952_p3 }
  0x4c   :  { %p4955_p6 = pnand %p4954_p5, %p4948_p2 }
  0x4e   :  { %4958 = shalt.err (!%p4955_p6)
}
  0x4f   :  { %91 = dma.hbm_to_vmem [thread:$0]  %s5133_s6, 16, %s89_s9, [#allocation11]  }
  0x50   :  { %4959 = dma.done.wait [#allocation3], 1536  }
  0x51   :  { %4960 = vsyncadd [#allocation3], 4294965760 }
  0x52   :  { %4961 = dma.done.wait [#allocation5], 49216  }
  0x53   :  { %4962 = vsyncadd [#allocation5], 4294918080 }
  0x54   :  { %4963 = dma.done.wait [#allocation8], 8224  }
  0x55   :  { %4964 = vsyncadd [#allocation8], 4294959072 }
  0x56   :  { %4965 = dma.done.wait [#allocation11], 2064  }
  0x57   :  { %4966 = vsyncadd [#allocation11], 4294965232  ;;  %v4130_v0 = vld [vmem:[#allocation4 + $0xe4] ss:$16 sps:$4 sm:$0xff]   ;;  %v4134_v2 = vld [vmem:[#allocation4 + $0xe0] ss:$16 sps:$4 sm:$0xff]  }
  0x58   :  { %v4132_v1 = vld [vmem:[#allocation4 + $0x2e4] ss:$16 sps:$4 sm:$0xff]   ;;  %2464 = vmatprep.subr.bf16.mxu0 %v4130_v0  ;;  %v4135_v3 = vld [vmem:[#allocation4 + $0x2e0] ss:$16 sps:$4 sm:$0xff]   ;;  %v115_v46 = vld [vmem:[#allocation2 + $0x8] sm:$0xff] }
  0x59   :  { %2505 = vmatprep.subr.bf16.mxu1 %v4132_v1  ;;  %v4136_v4 = vld [vmem:[#allocation4 + $0xc4] ss:$16 sps:$4 sm:$0xff]   ;;  %2465 = vmatpush1.bf16.msra.mxu0 %v4134_v2  ;;  %v4140_v6 = vld [vmem:[#allocation4 + $0xc0] ss:$16 sps:$4 sm:$0xff]   ;;  %v5041_v49 = vpack.c.bf16 %v115_v46, %v115_v46  ;;  %v117_v50 = vld [vmem:[#allocation2 + $0x18] sm:$0xff] }
  0x5a   :  { %2506 = vmatpush1.bf16.msra.mxu1 %v4135_v3  ;;  %v4138_v5 = vld [vmem:[#allocation4 + $0x2c4] ss:$16 sps:$4 sm:$0xff]   ;;  %2466 = vmatprep.subr.bf16.mxu0 %v4136_v4  ;;  %v4141_v7 = vld [vmem:[#allocation4 + $0x2c0] ss:$16 sps:$4 sm:$0xff]   ;;  %v5043_v52 = vpack.c.bf16 %v117_v50, %v117_v50 }
  0x5b   :  { %2507 = vmatprep.subr.bf16.mxu1 %v4138_v5  ;;  %v4142_v8 = vld [vmem:[#allocation4 + $0xa4] ss:$16 sps:$4 sm:$0xff]   ;;  %v4146_v10 = vld [vmem:[#allocation4 + $0xa0] ss:$16 sps:$4 sm:$0xff]   ;;  %2496 = vmatprep.mubr.bf16.mxu0 %v5041_v49 }
  0x5c   :  { %v4144_v9 = vld [vmem:[#allocation4 + $0x2a4] ss:$16 sps:$4 sm:$0xff]   ;;  %v4147_v11 = vld [vmem:[#allocation4 + $0x2a0] ss:$16 sps:$4 sm:$0xff]   ;;  %2537 = vmatprep.mubr.bf16.mxu1 %v5043_v52 }
  0x5d   :  { %2467 = vmatpush1.bf16.msra.mxu0 %v4140_v6  ;;  %v4148_v12 = vld [vmem:[#allocation4 + $0x84] ss:$16 sps:$4 sm:$0xff]   ;;  %v4152_v14 = vld [vmem:[#allocation4 + $0x80] ss:$16 sps:$4 sm:$0xff]  }
  0x5e   :  { %2508 = vmatpush1.bf16.msra.mxu1 %v4141_v7  ;;  %2468 = vmatprep.subr.bf16.mxu0 %v4142_v8  ;;  %v4150_v13 = vld [vmem:[#allocation4 + $0x284] ss:$16 sps:$4 sm:$0xff]   ;;  %v4153_v15 = vld [vmem:[#allocation4 + $0x280] ss:$16 sps:$4 sm:$0xff]  }
  0x5f   :  { %2509 = vmatprep.subr.bf16.mxu1 %v4144_v9  ;;  %v4154_v16 = vld [vmem:[#allocation4 + $0x64] ss:$16 sps:$4 sm:$0xff]   ;;  %v4158_v18 = vld [vmem:[#allocation4 + $0x60] ss:$16 sps:$4 sm:$0xff]  }
  0x60   :  { %v4156_v17 = vld [vmem:[#allocation4 + $0x264] ss:$16 sps:$4 sm:$0xff]   ;;  %v4159_v19 = vld [vmem:[#allocation4 + $0x260] ss:$16 sps:$4 sm:$0xff]  }
  0x61   :  { %2469 = vmatpush1.bf16.msra.mxu0 %v4146_v10  ;;  %v4160_v20 = vld [vmem:[#allocation4 + $0x44] ss:$16 sps:$4 sm:$0xff]   ;;  %v4164_v22 = vld [vmem:[#allocation4 + $0x40] ss:$16 sps:$4 sm:$0xff]  }
  0x62   :  { %2510 = vmatpush1.bf16.msra.mxu1 %v4147_v11  ;;  %2470 = vmatprep.subr.bf16.mxu0 %v4148_v12  ;;  %v4162_v21 = vld [vmem:[#allocation4 + $0x244] ss:$16 sps:$4 sm:$0xff]   ;;  %v4165_v23 = vld [vmem:[#allocation4 + $0x240] ss:$16 sps:$4 sm:$0xff]  }
  0x63   :  { %2511 = vmatprep.subr.bf16.mxu1 %v4150_v13  ;;  %v4166_v24 = vld [vmem:[#allocation4 + $0x24] ss:$16 sps:$4 sm:$0xff]   ;;  %v4170_v26 = vld [vmem:[#allocation4 + $0x20] ss:$16 sps:$4 sm:$0xff]  }
  0x64   :  { %v4168_v25 = vld [vmem:[#allocation4 + $0x224] ss:$16 sps:$4 sm:$0xff]   ;;  %v4171_v27 = vld [vmem:[#allocation4 + $0x220] ss:$16 sps:$4 sm:$0xff]  }
  0x65   :  { %2471 = vmatpush1.bf16.msra.mxu0 %v4152_v14  ;;  %v4172_v28 = vld [vmem:[#allocation4 + $0x4] ss:$16 sps:$4 sm:$0xff]   ;;  %v4176_v30 = vld [vmem:[#allocation4] ss:$16 sps:$4 sm:$0xff]  }
  0x66   :  { %2512 = vmatpush1.bf16.msra.mxu1 %v4153_v15  ;;  %2472 = vmatprep.subr.bf16.mxu0 %v4154_v16  ;;  %v4174_v29 = vld [vmem:[#allocation4 + $0x204] ss:$16 sps:$4 sm:$0xff]   ;;  %v4177_v31 = vld [vmem:[#allocation4 + $0x200] ss:$16 sps:$4 sm:$0xff]  }
  0x67   :  { %2513 = vmatprep.subr.bf16.mxu1 %v4156_v17  ;;  %v4178_v32 = vld [vmem:[#allocation4 + $0x1e4] ss:$16 sps:$4 sm:$0xff]   ;;  %v4182_v34 = vld [vmem:[#allocation4 + $0x1e0] ss:$16 sps:$4 sm:$0xff]  }
  0x68   :  { %v4180_v33 = vld [vmem:[#allocation4 + $0x3e4] ss:$16 sps:$4 sm:$0xff]   ;;  %v4183_v35 = vld [vmem:[#allocation4 + $0x3e0] ss:$16 sps:$4 sm:$0xff]  }
  0x69   :  { %2473 = vmatpush1.bf16.msra.mxu0 %v4158_v18  ;;  %v4184_v36 = vld [vmem:[#allocation4 + $0x1c4] ss:$16 sps:$4 sm:$0xff]   ;;  %v4188_v38 = vld [vmem:[#allocation4 + $0x1c0] ss:$16 sps:$4 sm:$0xff]  }
  0x6a   :  { %2514 = vmatpush1.bf16.msra.mxu1 %v4159_v19  ;;  %2474 = vmatprep.subr.bf16.mxu0 %v4160_v20  ;;  %v4186_v37 = vld [vmem:[#allocation4 + $0x3c4] ss:$16 sps:$4 sm:$0xff]   ;;  %v4189_v39 = vld [vmem:[#allocation4 + $0x3c0] ss:$16 sps:$4 sm:$0xff]  }
  0x6b   :  { %2515 = vmatprep.subr.bf16.mxu1 %v4162_v21  ;;  %v4190_v40 = vld [vmem:[#allocation4 + $0x1a4] ss:$16 sps:$4 sm:$0xff]   ;;  %v4194_v42 = vld [vmem:[#allocation4 + $0x1a0] ss:$16 sps:$4 sm:$0xff]  }
  0x6c   :  { %v4192_v41 = vld [vmem:[#allocation4 + $0x3a4] ss:$16 sps:$4 sm:$0xff]   ;;  %v4195_v43 = vld [vmem:[#allocation4 + $0x3a0] ss:$16 sps:$4 sm:$0xff]  }
  0x6d   :  { %2475 = vmatpush1.bf16.msra.mxu0 %v4164_v22  ;;  %v4196_v44 = vld [vmem:[#allocation4 + $0x184] ss:$16 sps:$4 sm:$0xff]   ;;  %v4200_v47 = vld [vmem:[#allocation4 + $0x180] ss:$16 sps:$4 sm:$0xff]  }
  0x6e   :  { %2516 = vmatpush1.bf16.msra.mxu1 %v4165_v23  ;;  %2476 = vmatprep.subr.bf16.mxu0 %v4166_v24  ;;  %v4198_v45 = vld [vmem:[#allocation4 + $0x384] ss:$16 sps:$4 sm:$0xff]   ;;  %v4201_v48 = vld [vmem:[#allocation4 + $0x380] ss:$16 sps:$4 sm:$0xff]  }
  0x6f   :  { %2517 = vmatprep.subr.bf16.mxu1 %v4168_v25  ;;  %v4202_v51 = vld [vmem:[#allocation4 + $0x164] ss:$16 sps:$4 sm:$0xff]   ;;  %v4206_v54 = vld [vmem:[#allocation4 + $0x160] ss:$16 sps:$4 sm:$0xff]  }
  0x70   :  { %v4204_v53 = vld [vmem:[#allocation4 + $0x364] ss:$16 sps:$4 sm:$0xff]   ;;  %v4207_v55 = vld [vmem:[#allocation4 + $0x360] ss:$16 sps:$4 sm:$0xff]  }
  0x71   :  { %2477 = vmatpush1.bf16.msra.mxu0 %v4170_v26  ;;  %v4208_v56 = vld [vmem:[#allocation4 + $0x144] ss:$16 sps:$4 sm:$0xff]   ;;  %v4212_v58 = vld [vmem:[#allocation4 + $0x140] ss:$16 sps:$4 sm:$0xff]  }
  0x72   :  { %2518 = vmatpush1.bf16.msra.mxu1 %v4171_v27  ;;  %2478 = vmatprep.subr.bf16.mxu0 %v4172_v28  ;;  %v4210_v57 = vld [vmem:[#allocation4 + $0x344] ss:$16 sps:$4 sm:$0xff]   ;;  %v4213_v59 = vld [vmem:[#allocation4 + $0x340] ss:$16 sps:$4 sm:$0xff]  }
  0x73   :  { %2519 = vmatprep.subr.bf16.mxu1 %v4174_v29  ;;  %v4214_v60 = vld [vmem:[#allocation4 + $0x124] ss:$16 sps:$4 sm:$0xff]   ;;  %v4218_v62 = vld [vmem:[#allocation4 + $0x120] ss:$16 sps:$4 sm:$0xff]  }
  0x74   :  { %v4216_v61 = vld [vmem:[#allocation4 + $0x324] ss:$16 sps:$4 sm:$0xff]   ;;  %v4219_v63 = vld [vmem:[#allocation4 + $0x320] ss:$16 sps:$4 sm:$0xff]  }
  0x75   :  { %2479 = vmatpush1.bf16.msra.mxu0 %v4176_v30  ;;  %v4220_v0 = vld [vmem:[#allocation4 + $0x104] ss:$16 sps:$4 sm:$0xff]   ;;  %v4224_v2 = vld [vmem:[#allocation4 + $0x100] ss:$16 sps:$4 sm:$0xff]  }
  0x76   :  { %2520 = vmatpush1.bf16.msra.mxu1 %v4177_v31  ;;  %2480 = vmatprep.subr.bf16.mxu0 %v4178_v32  ;;  %v4222_v1 = vld [vmem:[#allocation4 + $0x304] ss:$16 sps:$4 sm:$0xff]   ;;  %v4225_v3 = vld [vmem:[#allocation4 + $0x300] ss:$16 sps:$4 sm:$0xff]  }
  0x77   :  { %2521 = vmatprep.subr.bf16.mxu1 %v4180_v33  ;;  %v114_v4 = vld [vmem:[#allocation2] sm:$0xff]  ;;  %v116_v5 = vld [vmem:[#allocation2 + $0x10] sm:$0xff] }
  0x78   :  { %v4228_v6 = vld [vmem:[#allocation4 + $0x4e4] ss:$16 sps:$4 sm:$0xff]   ;;  %v5047_v8 = vpack.c.bf16 %v114_v4, %v114_v4  ;;  %v5049_v9 = vpack.c.bf16 %v116_v5, %v116_v5  ;;  %v4226_v10 = vld [vmem:[#allocation4 + $0x4e0] ss:$16 sps:$4 sm:$0xff]  }
  0x79   :  { %2481 = vmatpush2.bf16.msra.mxu0 %v4182_v34  ;;  %v4231_v7 = vld [vmem:[#allocation4 + $0x6e4] ss:$16 sps:$4 sm:$0xff]   ;;  %v4229_v11 = vld [vmem:[#allocation4 + $0x6e0] ss:$16 sps:$4 sm:$0xff]   ;;  %v119_v34 = vld [vmem:[#allocation2 + $0x28] sm:$0xff] }
  0x7a   :  { %2522 = vmatpush2.bf16.msra.mxu1 %v4183_v35  ;;  %2482 = vmatprep.subr.bf16.mxu0 %v4184_v36  ;;  %v4234_v12 = vld [vmem:[#allocation4 + $0x4c4] ss:$16 sps:$4 sm:$0xff]   ;;  %v4232_v14 = vld [vmem:[#allocation4 + $0x4c0] ss:$16 sps:$4 sm:$0xff]  }
  0x7b   :  { %2523 = vmatprep.subr.bf16.mxu1 %v4186_v37  ;;  %v4237_v13 = vld [vmem:[#allocation4 + $0x6c4] ss:$16 sps:$4 sm:$0xff]   ;;  %v4235_v15 = vld [vmem:[#allocation4 + $0x6c0] ss:$16 sps:$4 sm:$0xff]   ;;  %v5053_v37 = vpack.c.bf16 %v119_v34, %v119_v34 }
  0x7c   :  { %v4240_v16 = vld [vmem:[#allocation4 + $0x4a4] ss:$16 sps:$4 sm:$0xff]   ;;  %v4238_v18 = vld [vmem:[#allocation4 + $0x4a0] ss:$16 sps:$4 sm:$0xff]  }
  0x7d   :  { %2483 = vmatpush2.bf16.msra.mxu0 %v4188_v38  ;;  %v4243_v17 = vld [vmem:[#allocation4 + $0x6a4] ss:$16 sps:$4 sm:$0xff]   ;;  %v4241_v19 = vld [vmem:[#allocation4 + $0x6a0] ss:$16 sps:$4 sm:$0xff]   ;;  %v121_v38 = vld [vmem:[#allocation2 + $0x38] sm:$0xff] }
  0x7e   :  { %2524 = vmatpush2.bf16.msra.mxu1 %v4189_v39  ;;  %2484 = vmatprep.subr.bf16.mxu0 %v4190_v40  ;;  %v4246_v20 = vld [vmem:[#allocation4 + $0x484] ss:$16 sps:$4 sm:$0xff]   ;;  %v4244_v22 = vld [vmem:[#allocation4 + $0x480] ss:$16 sps:$4 sm:$0xff]   ;;  %v5055_v40 = vpack.c.bf16 %v121_v38, %v121_v38 }
  0x7f   :  { %2525 = vmatprep.subr.bf16.mxu1 %v4192_v41  ;;  %v4249_v21 = vld [vmem:[#allocation4 + $0x684] ss:$16 sps:$4 sm:$0xff]   ;;  %v4247_v23 = vld [vmem:[#allocation4 + $0x680] ss:$16 sps:$4 sm:$0xff]  }
  0x80   :  { %v4252_v24 = vld [vmem:[#allocation4 + $0x464] ss:$16 sps:$4 sm:$0xff]   ;;  %v4250_v26 = vld [vmem:[#allocation4 + $0x460] ss:$16 sps:$4 sm:$0xff]  }
  0x81   :  { %2485 = vmatpush2.bf16.msra.mxu0 %v4194_v42  ;;  %v4255_v25 = vld [vmem:[#allocation4 + $0x664] ss:$16 sps:$4 sm:$0xff]   ;;  %v4253_v27 = vld [vmem:[#allocation4 + $0x660] ss:$16 sps:$4 sm:$0xff]  }
  0x82   :  { %2526 = vmatpush2.bf16.msra.mxu1 %v4195_v43  ;;  %2486 = vmatprep.subr.bf16.mxu0 %v4196_v44  ;;  %v4258_v28 = vld [vmem:[#allocation4 + $0x444] ss:$16 sps:$4 sm:$0xff]   ;;  %v4256_v30 = vld [vmem:[#allocation4 + $0x440] ss:$16 sps:$4 sm:$0xff]  }
  0x83   :  { %2527 = vmatprep.subr.bf16.mxu1 %v4198_v45  ;;  %v4261_v29 = vld [vmem:[#allocation4 + $0x644] ss:$16 sps:$4 sm:$0xff]   ;;  %v4259_v31 = vld [vmem:[#allocation4 + $0x640] ss:$16 sps:$4 sm:$0xff]  }
  0x84   :  { %v4264_v32 = vld [vmem:[#allocation4 + $0x424] ss:$16 sps:$4 sm:$0xff]   ;;  %v4262_v35 = vld [vmem:[#allocation4 + $0x420] ss:$16 sps:$4 sm:$0xff]  }
  0x85   :  { %2487 = vmatpush2.bf16.msra.mxu0 %v4200_v47  ;;  %v4267_v33 = vld [vmem:[#allocation4 + $0x624] ss:$16 sps:$4 sm:$0xff]   ;;  %v4265_v36 = vld [vmem:[#allocation4 + $0x620] ss:$16 sps:$4 sm:$0xff]  }
  0x86   :  { %2528 = vmatpush2.bf16.msra.mxu1 %v4201_v48  ;;  %2488 = vmatprep.subr.bf16.mxu0 %v4202_v51  ;;  %v4270_v39 = vld [vmem:[#allocation4 + $0x404] ss:$16 sps:$4 sm:$0xff]   ;;  %v4268_v42 = vld [vmem:[#allocation4 + $0x400] ss:$16 sps:$4 sm:$0xff]  }
  0x87   :  { %2529 = vmatprep.subr.bf16.mxu1 %v4204_v53  ;;  %v4273_v41 = vld [vmem:[#allocation4 + $0x604] ss:$16 sps:$4 sm:$0xff]   ;;  %v4271_v43 = vld [vmem:[#allocation4 + $0x600] ss:$16 sps:$4 sm:$0xff]  }
  0x88   :  { %v4276_v44 = vld [vmem:[#allocation4 + $0x5e4] ss:$16 sps:$4 sm:$0xff]   ;;  %v4274_v46 = vld [vmem:[#allocation4 + $0x5e0] ss:$16 sps:$4 sm:$0xff]  }
  0x89   :  { %2489 = vmatpush2.bf16.msra.mxu0 %v4206_v54  ;;  %v4279_v45 = vld [vmem:[#allocation4 + $0x7e4] ss:$16 sps:$4 sm:$0xff]   ;;  %v4277_v47 = vld [vmem:[#allocation4 + $0x7e0] ss:$16 sps:$4 sm:$0xff]  }
  0x8a   :  { %2530 = vmatpush2.bf16.msra.mxu1 %v4207_v55  ;;  %2490 = vmatprep.subr.bf16.mxu0 %v4208_v56  ;;  %v4282_v48 = vld [vmem:[#allocation4 + $0x5c4] ss:$16 sps:$4 sm:$0xff]   ;;  %v4280_v51 = vld [vmem:[#allocation4 + $0x5c0] ss:$16 sps:$4 sm:$0xff]  }
  0x8b   :  { %2531 = vmatprep.subr.bf16.mxu1 %v4210_v57  ;;  %v4285_v50 = vld [vmem:[#allocation4 + $0x7c4] ss:$16 sps:$4 sm:$0xff]   ;;  %v4283_v53 = vld [vmem:[#allocation4 + $0x7c0] ss:$16 sps:$4 sm:$0xff]  }
  0x8c   :  { %v4288_v54 = vld [vmem:[#allocation4 + $0x5a4] ss:$16 sps:$4 sm:$0xff]   ;;  %v4286_v56 = vld [vmem:[#allocation4 + $0x5a0] ss:$16 sps:$4 sm:$0xff]  }
  0x8d   :  { %2491 = vmatpush2.bf16.msra.mxu0 %v4212_v58  ;;  %v4291_v55 = vld [vmem:[#allocation4 + $0x7a4] ss:$16 sps:$4 sm:$0xff]   ;;  %v4289_v57 = vld [vmem:[#allocation4 + $0x7a0] ss:$16 sps:$4 sm:$0xff]  }
  0x8e   :  { %2532 = vmatpush2.bf16.msra.mxu1 %v4213_v59  ;;  %2492 = vmatprep.subr.bf16.mxu0 %v4214_v60  ;;  %v4294_v58 = vld [vmem:[#allocation4 + $0x584] ss:$16 sps:$4 sm:$0xff]   ;;  %v4292_v60 = vld [vmem:[#allocation4 + $0x580] ss:$16 sps:$4 sm:$0xff]  }
  0x8f   :  { %2533 = vmatprep.subr.bf16.mxu1 %v4216_v61  ;;  %v4297_v59 = vld [vmem:[#allocation4 + $0x784] ss:$16 sps:$4 sm:$0xff]   ;;  %v4295_v61 = vld [vmem:[#allocation4 + $0x780] ss:$16 sps:$4 sm:$0xff]  }
  0x90   :  { %v4304_v4 = vld [vmem:[#allocation4 + $0x540] ss:$16 sps:$4 sm:$0xff]   ;;  %v4345_v38 = vld [vmem:[#allocation4 + $0xa84] ss:$16 sps:$4 sm:$0xff]  }
  0x91   :  { %2493 = vmatpush2.bf16.msra.mxu0 %v4218_v62  ;;  %v4300_v62 = vld [vmem:[#allocation4 + $0x564] ss:$16 sps:$4 sm:$0xff]   ;;  %v4307_v5 = vld [vmem:[#allocation4 + $0x740] ss:$16 sps:$4 sm:$0xff]  }
  0x92   :  { %2534 = vmatpush2.bf16.msra.mxu1 %v4219_v63  ;;  %2494 = vmatprep.subr.bf16.mxu0 %v4220_v0  ;;  %v4303_v63 = vld [vmem:[#allocation4 + $0x764] ss:$16 sps:$4 sm:$0xff]   ;;  %v4298_v0 = vld [vmem:[#allocation4 + $0x560] ss:$16 sps:$4 sm:$0xff]  }
  0x93   :  { %2535 = vmatprep.subr.bf16.mxu1 %v4222_v1  ;;  %v4301_v1 = vld [vmem:[#allocation4 + $0x760] ss:$16 sps:$4 sm:$0xff]  }
  0x94   :  { %v4334_v34 = vld [vmem:[#allocation4 + $0x8a0] ss:$16 sps:$4 sm:$0xff]  }
  0x95   :  { %2495 = vmatpush2.bf16.msra.mxu0 %v4224_v2  ;;  %v4306_v2 = vld [vmem:[#allocation4 + $0x544] ss:$16 sps:$4 sm:$0xff]  }
  0x96   :  { %2536 = vmatpush2.bf16.msra.mxu1 %v4225_v3  ;;  %2546 = vmatprep.subr.bf16.mxu0 %v4228_v6  ;;  %v4309_v3 = vld [vmem:[#allocation4 + $0x744] ss:$16 sps:$4 sm:$0xff]  }
  0x97   :  { %2587 = vmatprep.subr.bf16.mxu1 %v4231_v7  ;;  %v4312_v6 = vld [vmem:[#allocation4 + $0x524] ss:$16 sps:$4 sm:$0xff]  }
  0x98   :  { %2497 = vmatmul.mubr.bf16.vlgmr.msra.gmra.mxu0 %v5047_v8  ;;  %v4315_v7 = vld [vmem:[#allocation4 + $0x724] ss:$16 sps:$4 sm:$0xff]  }
  0x99   :  { %2538 = vmatmul.mubr.bf16.vlgmr.msra.gmra.mxu1 %v5049_v9  ;;  %2547 = vmatpush1.bf16.msra.mxu0 %v4226_v10  ;;  %v4310_v10 = vld [vmem:[#allocation4 + $0x520] ss:$16 sps:$4 sm:$0xff]  }
  0x9a   :  { %2588 = vmatpush1.bf16.msra.mxu1 %v4229_v11  ;;  %2548 = vmatprep.subr.bf16.mxu0 %v4234_v12  ;;  %v4313_v11 = vld [vmem:[#allocation4 + $0x720] ss:$16 sps:$4 sm:$0xff]   ;;  %v4318_v12 = vld [vmem:[#allocation4 + $0x504] ss:$16 sps:$4 sm:$0xff]  }
  0x9b   :  { %2589 = vmatprep.subr.bf16.mxu1 %v4237_v13  ;;  %2578 = vmatprep.mubr.bf16.mxu0 %v5053_v37  ;;  %v4321_v13 = vld [vmem:[#allocation4 + $0x704] ss:$16 sps:$4 sm:$0xff]  }
  0x9c   :  { %2619 = vmatprep.mubr.bf16.mxu1 %v5055_v40 }
  0x9d   :  { %2549 = vmatpush1.bf16.msra.mxu0 %v4232_v14  ;;  %v4316_v14 = vld [vmem:[#allocation4 + $0x500] ss:$16 sps:$4 sm:$0xff]  }
  0x9e   :  { %2590 = vmatpush1.bf16.msra.mxu1 %v4235_v15  ;;  %2550 = vmatprep.subr.bf16.mxu0 %v4240_v16  ;;  %v4319_v15 = vld [vmem:[#allocation4 + $0x700] ss:$16 sps:$4 sm:$0xff]  }
  0x9f   :  { %2591 = vmatprep.subr.bf16.mxu1 %v4243_v17  ;;  %v118_v16 = vld [vmem:[#allocation2 + $0x20] sm:$0xff]  ;;  %v120_v17 = vld [vmem:[#allocation2 + $0x30] sm:$0xff] }
  0xa1   :  { %2551 = vmatpush1.bf16.msra.mxu0 %v4238_v18  ;;  %v4324_v18 = vld [vmem:[#allocation4 + $0x8e4] ss:$16 sps:$4 sm:$0xff]  }
  0xa2   :  { %2592 = vmatpush1.bf16.msra.mxu1 %v4241_v19  ;;  %2552 = vmatprep.subr.bf16.mxu0 %v4246_v20  ;;  %v4327_v19 = vld [vmem:[#allocation4 + $0xae4] ss:$16 sps:$4 sm:$0xff]   ;;  %v5059_v20 = vpack.c.bf16 %v118_v16, %v118_v16  ;;  %v4394_v16 = vld [vmem:[#allocation4 + $0x960] ss:$16 sps:$4 sm:$0xff]  }
  0xa3   :  { %2593 = vmatprep.subr.bf16.mxu1 %v4249_v21  ;;  %v5061_v21 = vpack.c.bf16 %v120_v17, %v120_v17  ;;  %v4397_v17 = vld [vmem:[#allocation4 + $0xb60] ss:$16 sps:$4 sm:$0xff]  }
  0xa5   :  { %2553 = vmatpush1.bf16.msra.mxu0 %v4244_v22  ;;  %v4322_v22 = vld [vmem:[#allocation4 + $0x8e0] ss:$16 sps:$4 sm:$0xff]  }
  0xa6   :  { %2594 = vmatpush1.bf16.msra.mxu1 %v4247_v23  ;;  %2554 = vmatprep.subr.bf16.mxu0 %v4252_v24  ;;  %v4325_v23 = vld [vmem:[#allocation4 + $0xae0] ss:$16 sps:$4 sm:$0xff]   ;;  %v4330_v24 = vld [vmem:[#allocation4 + $0x8c4] ss:$16 sps:$4 sm:$0xff]  }
  0xa7   :  { %2595 = vmatprep.subr.bf16.mxu1 %v4255_v25  ;;  %v4333_v25 = vld [vmem:[#allocation4 + $0xac4] ss:$16 sps:$4 sm:$0xff]  }
  0xa9   :  { %2555 = vmatpush1.bf16.msra.mxu0 %v4250_v26  ;;  %v123_v26 = vld [vmem:[#allocation2 + $0x48] sm:$0xff] }
  0xaa   :  { %2596 = vmatpush1.bf16.msra.mxu1 %v4253_v27  ;;  %2556 = vmatprep.subr.bf16.mxu0 %v4258_v28  ;;  %v4328_v27 = vld [vmem:[#allocation4 + $0x8c0] ss:$16 sps:$4 sm:$0xff]  }
  0xab   :  { %2597 = vmatprep.subr.bf16.mxu1 %v4261_v29  ;;  %v4331_v28 = vld [vmem:[#allocation4 + $0xac0] ss:$16 sps:$4 sm:$0xff]   ;;  %v5065_v29 = vpack.c.bf16 %v123_v26, %v123_v26 }
  0xac   :  { %v4406_v26 = vld [vmem:[#allocation4 + $0x920] ss:$16 sps:$4 sm:$0xff]  }
  0xad   :  { %2557 = vmatpush1.bf16.msra.mxu0 %v4256_v30  ;;  %v125_v30 = vld [vmem:[#allocation2 + $0x58] sm:$0xff] }
  0xae   :  { %2598 = vmatpush1.bf16.msra.mxu1 %v4259_v31  ;;  %2558 = vmatprep.subr.bf16.mxu0 %v4264_v32  ;;  %v4336_v31 = vld [vmem:[#allocation4 + $0x8a4] ss:$16 sps:$4 sm:$0xff]   ;;  %v5067_v32 = vpack.c.bf16 %v125_v30, %v125_v30 }
  0xaf   :  { %2599 = vmatprep.subr.bf16.mxu1 %v4267_v33  ;;  %v4339_v33 = vld [vmem:[#allocation4 + $0xaa4] ss:$16 sps:$4 sm:$0xff]  }
  0xb0   :  { %v4417_v30 = vld [vmem:[#allocation4 + $0xb04] ss:$16 sps:$4 sm:$0xff]  }
  0xb1   :  { %2559 = vmatpush1.bf16.msra.mxu0 %v4262_v35  ;;  %v4337_v35 = vld [vmem:[#allocation4 + $0xaa0] ss:$16 sps:$4 sm:$0xff]  }
  0xb2   :  { %2600 = vmatpush1.bf16.msra.mxu1 %v4265_v36  ;;  %2560 = vmatprep.subr.bf16.mxu0 %v4270_v39  ;;  %v4342_v36 = vld [vmem:[#allocation4 + $0x884] ss:$16 sps:$4 sm:$0xff]   ;;  %v4340_v39 = vld [vmem:[#allocation4 + $0x880] ss:$16 sps:$4 sm:$0xff]  }
  0xb3   :  { %2601 = vmatprep.subr.bf16.mxu1 %v4273_v41  ;;  %v4343_v41 = vld [vmem:[#allocation4 + $0xa80] ss:$16 sps:$4 sm:$0xff]  }
  0xb5   :  { %2561 = vmatpush1.bf16.msra.mxu0 %v4268_v42  ;;  %v4348_v42 = vld [vmem:[#allocation4 + $0x864] ss:$16 sps:$4 sm:$0xff]  }
  0xb6   :  { %2602 = vmatpush1.bf16.msra.mxu1 %v4271_v43  ;;  %2562 = vmatprep.subr.bf16.mxu0 %v4276_v44  ;;  %v4351_v43 = vld [vmem:[#allocation4 + $0xa64] ss:$16 sps:$4 sm:$0xff]   ;;  %v4346_v44 = vld [vmem:[#allocation4 + $0x860] ss:$16 sps:$4 sm:$0xff]  }
  0xb7   :  { %2603 = vmatprep.subr.bf16.mxu1 %v4279_v45  ;;  %v4349_v45 = vld [vmem:[#allocation4 + $0xa60] ss:$16 sps:$4 sm:$0xff]  }
  0xb9   :  { %2563 = vmatpush2.bf16.msra.mxu0 %v4274_v46  ;;  %v4354_v46 = vld [vmem:[#allocation4 + $0x844] ss:$16 sps:$4 sm:$0xff]  }
  0xba   :  { %2604 = vmatpush2.bf16.msra.mxu1 %v4277_v47  ;;  %2564 = vmatprep.subr.bf16.mxu0 %v4282_v48  ;;  %v4357_v47 = vld [vmem:[#allocation4 + $0xa44] ss:$16 sps:$4 sm:$0xff]   ;;  %v4352_v48 = vld [vmem:[#allocation4 + $0x840] ss:$16 sps:$4 sm:$0xff]  }
  0xbb   :  { %2605 = vmatprep.subr.bf16.mxu1 %v4285_v50  ;;  %v4355_v50 = vld [vmem:[#allocation4 + $0xa40] ss:$16 sps:$4 sm:$0xff]  }
  0xbd   :  { %2565 = vmatpush2.bf16.msra.mxu0 %v4280_v51  ;;  %v4360_v51 = vld [vmem:[#allocation4 + $0x824] ss:$16 sps:$4 sm:$0xff]  }
  0xbe   :  { %2606 = vmatpush2.bf16.msra.mxu1 %v4283_v53  ;;  %2566 = vmatprep.subr.bf16.mxu0 %v4288_v54  ;;  %v4363_v53 = vld [vmem:[#allocation4 + $0xa24] ss:$16 sps:$4 sm:$0xff]   ;;  %v4358_v54 = vld [vmem:[#allocation4 + $0x820] ss:$16 sps:$4 sm:$0xff]  }
  0xbf   :  { %2607 = vmatprep.subr.bf16.mxu1 %v4291_v55  ;;  %v4361_v55 = vld [vmem:[#allocation4 + $0xa20] ss:$16 sps:$4 sm:$0xff]  }
  0xc1   :  { %2567 = vmatpush2.bf16.msra.mxu0 %v4286_v56  ;;  %v4366_v56 = vld [vmem:[#allocation4 + $0x804] ss:$16 sps:$4 sm:$0xff]  }
  0xc2   :  { %2608 = vmatpush2.bf16.msra.mxu1 %v4289_v57  ;;  %2568 = vmatprep.subr.bf16.mxu0 %v4294_v58  ;;  %v4369_v57 = vld [vmem:[#allocation4 + $0xa04] ss:$16 sps:$4 sm:$0xff]   ;;  %v4364_v58 = vld [vmem:[#allocation4 + $0x800] ss:$16 sps:$4 sm:$0xff]  }
  0xc3   :  { %2609 = vmatprep.subr.bf16.mxu1 %v4297_v59  ;;  %v4367_v59 = vld [vmem:[#allocation4 + $0xa00] ss:$16 sps:$4 sm:$0xff]  }
  0xc5   :  { %2569 = vmatpush2.bf16.msra.mxu0 %v4292_v60  ;;  %v4372_v60 = vld [vmem:[#allocation4 + $0x9e4] ss:$16 sps:$4 sm:$0xff]  }
  0xc6   :  { %2610 = vmatpush2.bf16.msra.mxu1 %v4295_v61  ;;  %2570 = vmatprep.subr.bf16.mxu0 %v4300_v62  ;;  %v4375_v61 = vld [vmem:[#allocation4 + $0xbe4] ss:$16 sps:$4 sm:$0xff]   ;;  %v4370_v62 = vld [vmem:[#allocation4 + $0x9e0] ss:$16 sps:$4 sm:$0xff]  }
  0xc7   :  { %2611 = vmatprep.subr.bf16.mxu1 %v4303_v63  ;;  %v4373_v63 = vld [vmem:[#allocation4 + $0xbe0] ss:$16 sps:$4 sm:$0xff]  }
  0xc9   :  { %2571 = vmatpush2.bf16.msra.mxu0 %v4298_v0  ;;  %v4378_v0 = vld [vmem:[#allocation4 + $0x9c4] ss:$16 sps:$4 sm:$0xff]  }
  0xca   :  { %2612 = vmatpush2.bf16.msra.mxu1 %v4301_v1  ;;  %2572 = vmatprep.subr.bf16.mxu0 %v4306_v2  ;;  %v4381_v1 = vld [vmem:[#allocation4 + $0xbc4] ss:$16 sps:$4 sm:$0xff]   ;;  %v4376_v2 = vld [vmem:[#allocation4 + $0x9c0] ss:$16 sps:$4 sm:$0xff]  }
  0xcb   :  { %2613 = vmatprep.subr.bf16.mxu1 %v4309_v3  ;;  %v4379_v3 = vld [vmem:[#allocation4 + $0xbc0] ss:$16 sps:$4 sm:$0xff]  }
  0xcd   :  { %2573 = vmatpush2.bf16.msra.mxu0 %v4304_v4  ;;  %v4384_v4 = vld [vmem:[#allocation4 + $0x9a4] ss:$16 sps:$4 sm:$0xff]  }
  0xce   :  { %2614 = vmatpush2.bf16.msra.mxu1 %v4307_v5  ;;  %2574 = vmatprep.subr.bf16.mxu0 %v4312_v6  ;;  %v4387_v5 = vld [vmem:[#allocation4 + $0xba4] ss:$16 sps:$4 sm:$0xff]   ;;  %v4382_v6 = vld [vmem:[#allocation4 + $0x9a0] ss:$16 sps:$4 sm:$0xff]  }
  0xcf   :  { %2615 = vmatprep.subr.bf16.mxu1 %v4315_v7  ;;  %v4385_v7 = vld [vmem:[#allocation4 + $0xba0] ss:$16 sps:$4 sm:$0xff]  }
  0xd1   :  { %2575 = vmatpush2.bf16.msra.mxu0 %v4310_v10  ;;  %v4390_v10 = vld [vmem:[#allocation4 + $0x984] ss:$16 sps:$4 sm:$0xff]  }
  0xd2   :  { %2616 = vmatpush2.bf16.msra.mxu1 %v4313_v11  ;;  %2576 = vmatprep.subr.bf16.mxu0 %v4318_v12  ;;  %v4393_v11 = vld [vmem:[#allocation4 + $0xb84] ss:$16 sps:$4 sm:$0xff]   ;;  %v4388_v12 = vld [vmem:[#allocation4 + $0x980] ss:$16 sps:$4 sm:$0xff]  }
  0xd3   :  { %2617 = vmatprep.subr.bf16.mxu1 %v4321_v13  ;;  %v4391_v13 = vld [vmem:[#allocation4 + $0xb80] ss:$16 sps:$4 sm:$0xff]  }
  0xd5   :  { %2577 = vmatpush2.bf16.msra.mxu0 %v4316_v14  ;;  %v4396_v14 = vld [vmem:[#allocation4 + $0x964] ss:$16 sps:$4 sm:$0xff]  }
  0xd6   :  { %2618 = vmatpush2.bf16.msra.mxu1 %v4319_v15  ;;  %2628 = vmatprep.subr.bf16.mxu0 %v4324_v18  ;;  %v4399_v15 = vld [vmem:[#allocation4 + $0xb64] ss:$16 sps:$4 sm:$0xff]  }
  0xd7   :  { %2669 = vmatprep.subr.bf16.mxu1 %v4327_v19  ;;  %v4402_v18 = vld [vmem:[#allocation4 + $0x944] ss:$16 sps:$4 sm:$0xff]  }
  0xd8   :  { %2579 = vmatmul.mubr.bf16.vlgmr.msra.gmra.mxu0 %v5059_v20  ;;  %v4405_v19 = vld [vmem:[#allocation4 + $0xb44] ss:$16 sps:$4 sm:$0xff]  }
  0xd9   :  { %2620 = vmatmul.mubr.bf16.vlgmr.msra.gmra.mxu1 %v5061_v21  ;;  %2629 = vmatpush1.bf16.msra.mxu0 %v4322_v22  ;;  %v4400_v22 = vld [vmem:[#allocation4 + $0x940] ss:$16 sps:$4 sm:$0xff]  }
  0xda   :  { %2670 = vmatpush1.bf16.msra.mxu1 %v4325_v23  ;;  %2630 = vmatprep.subr.bf16.mxu0 %v4330_v24  ;;  %v4403_v23 = vld [vmem:[#allocation4 + $0xb40] ss:$16 sps:$4 sm:$0xff]   ;;  %v4408_v24 = vld [vmem:[#allocation4 + $0x924] ss:$16 sps:$4 sm:$0xff]  }
  0xdb   :  { %2671 = vmatprep.subr.bf16.mxu1 %v4333_v25  ;;  %2660 = vmatprep.mubr.bf16.mxu0 %v5065_v29  ;;  %v4411_v25 = vld [vmem:[#allocation4 + $0xb24] ss:$16 sps:$4 sm:$0xff]  }
  0xdc   :  { %2701 = vmatprep.mubr.bf16.mxu1 %v5067_v32 }
  0xdd   :  { %2631 = vmatpush1.bf16.msra.mxu0 %v4328_v27  ;;  %v4409_v27 = vld [vmem:[#allocation4 + $0xb20] ss:$16 sps:$4 sm:$0xff]  }
  0xde   :  { %2672 = vmatpush1.bf16.msra.mxu1 %v4331_v28  ;;  %2632 = vmatprep.subr.bf16.mxu0 %v4336_v31  ;;  %v4414_v28 = vld [vmem:[#allocation4 + $0x904] ss:$16 sps:$4 sm:$0xff]   ;;  %v4412_v31 = vld [vmem:[#allocation4 + $0x900] ss:$16 sps:$4 sm:$0xff]  }
  0xdf   :  { %2673 = vmatprep.subr.bf16.mxu1 %v4339_v33  ;;  %v4415_v33 = vld [vmem:[#allocation4 + $0xb00] ss:$16 sps:$4 sm:$0xff]  }
  0xe1   :  { %2633 = vmatpush1.bf16.msra.mxu0 %v4334_v34  ;;  %v122_v34 = vld [vmem:[#allocation2 + $0x40] sm:$0xff] }
  0xe2   :  { %2674 = vmatpush1.bf16.msra.mxu1 %v4337_v35  ;;  %2634 = vmatprep.subr.bf16.mxu0 %v4342_v36  ;;  %v124_v35 = vld [vmem:[#allocation2 + $0x50] sm:$0xff]  ;;  %v4420_v36 = vld [vmem:[#allocation4 + $0xec] ss:$16 sps:$4 sm:$0xff]  }
  0xe3   :  { %2675 = vmatprep.subr.bf16.mxu1 %v4345_v38  ;;  %v4423_v38 = vld [vmem:[#allocation4 + $0x2ec] ss:$16 sps:$4 sm:$0xff]  }
  0xe5   :  { %2635 = vmatpush1.bf16.msra.mxu0 %v4340_v39  ;;  %v5071_v39 = vpack.c.bf16 %v122_v34, %v122_v34  ;;  %v4498_v34 = vld [vmem:[#allocation4 + $0x14c] ss:$16 sps:$4 sm:$0xff]  }
  0xe6   :  { %2676 = vmatpush1.bf16.msra.mxu1 %v4343_v41  ;;  %2636 = vmatprep.subr.bf16.mxu0 %v4348_v42  ;;  %v5073_v41 = vpack.c.bf16 %v124_v35, %v124_v35  ;;  %v4418_v42 = vld [vmem:[#allocation4 + $0xe8] ss:$16 sps:$4 sm:$0xff]   ;;  %v4501_v35 = vld [vmem:[#allocation4 + $0x34c] ss:$16 sps:$4 sm:$0xff]  }
  0xe7   :  { %2677 = vmatprep.subr.bf16.mxu1 %v4351_v43  ;;  %v4421_v43 = vld [vmem:[#allocation4 + $0x2e8] ss:$16 sps:$4 sm:$0xff]  }
  0xe9   :  { %2637 = vmatpush1.bf16.msra.mxu0 %v4346_v44  ;;  %v4426_v44 = vld [vmem:[#allocation4 + $0xcc] ss:$16 sps:$4 sm:$0xff]  }
  0xea   :  { %2678 = vmatpush1.bf16.msra.mxu1 %v4349_v45  ;;  %2638 = vmatprep.subr.bf16.mxu0 %v4354_v46  ;;  %v4429_v45 = vld [vmem:[#allocation4 + $0x2cc] ss:$16 sps:$4 sm:$0xff]   ;;  %v4424_v46 = vld [vmem:[#allocation4 + $0xc8] ss:$16 sps:$4 sm:$0xff]  }
  0xeb   :  { %2679 = vmatprep.subr.bf16.mxu1 %v4357_v47  ;;  %v4427_v47 = vld [vmem:[#allocation4 + $0x2c8] ss:$16 sps:$4 sm:$0xff]  }
  0xed   :  { %2639 = vmatpush1.bf16.msra.mxu0 %v4352_v48  ;;  %v4432_v48 = vld [vmem:[#allocation4 + $0xac] ss:$16 sps:$4 sm:$0xff]  }
  0xee   :  { %2680 = vmatpush1.bf16.msra.mxu1 %v4355_v50  ;;  %2640 = vmatprep.subr.bf16.mxu0 %v4360_v51  ;;  %v4435_v50 = vld [vmem:[#allocation4 + $0x2ac] ss:$16 sps:$4 sm:$0xff]   ;;  %v4430_v51 = vld [vmem:[#allocation4 + $0xa8] ss:$16 sps:$4 sm:$0xff]  }
  0xef   :  { %2681 = vmatprep.subr.bf16.mxu1 %v4363_v53  ;;  %v4433_v53 = vld [vmem:[#allocation4 + $0x2a8] ss:$16 sps:$4 sm:$0xff]  }
  0xf1   :  { %2641 = vmatpush1.bf16.msra.mxu0 %v4358_v54  ;;  %v4438_v54 = vld [vmem:[#allocation4 + $0x8c] ss:$16 sps:$4 sm:$0xff]  }
  0xf2   :  { %2682 = vmatpush1.bf16.msra.mxu1 %v4361_v55  ;;  %2642 = vmatprep.subr.bf16.mxu0 %v4366_v56  ;;  %v4441_v55 = vld [vmem:[#allocation4 + $0x28c] ss:$16 sps:$4 sm:$0xff]   ;;  %v4436_v56 = vld [vmem:[#allocation4 + $0x88] ss:$16 sps:$4 sm:$0xff]  }
  0xf3   :  { %2683 = vmatprep.subr.bf16.mxu1 %v4369_v57  ;;  %v4439_v57 = vld [vmem:[#allocation4 + $0x288] ss:$16 sps:$4 sm:$0xff]  }
  0xf5   :  { %2643 = vmatpush1.bf16.msra.mxu0 %v4364_v58  ;;  %v4444_v58 = vld [vmem:[#allocation4 + $0x6c] ss:$16 sps:$4 sm:$0xff]  }
  0xf6   :  { %2684 = vmatpush1.bf16.msra.mxu1 %v4367_v59  ;;  %2644 = vmatprep.subr.bf16.mxu0 %v4372_v60  ;;  %v4447_v59 = vld [vmem:[#allocation4 + $0x26c] ss:$16 sps:$4 sm:$0xff]   ;;  %v4442_v60 = vld [vmem:[#allocation4 + $0x68] ss:$16 sps:$4 sm:$0xff]  }
  0xf7   :  { %2685 = vmatprep.subr.bf16.mxu1 %v4375_v61  ;;  %v4453_v61 = vld [vmem:[#allocation4 + $0x24c] ss:$16 sps:$4 sm:$0xff]  }
  0xf9   :  { %2645 = vmatpush2.bf16.msra.mxu0 %v4370_v62  ;;  %v4448_v62 = vld [vmem:[#allocation4 + $0x48] ss:$16 sps:$4 sm:$0xff]  }
  0xfa   :  { %2686 = vmatpush2.bf16.msra.mxu1 %v4373_v63  ;;  %2646 = vmatprep.subr.bf16.mxu0 %v4378_v0  ;;  %v4451_v63 = vld [vmem:[#allocation4 + $0x248] ss:$16 sps:$4 sm:$0xff]   ;;  %v4456_v0 = vld [vmem:[#allocation4 + $0x2c] ss:$16 sps:$4 sm:$0xff]  }
  0xfb   :  { %2687 = vmatprep.subr.bf16.mxu1 %v4381_v1  ;;  %v4459_v1 = vld [vmem:[#allocation4 + $0x22c] ss:$16 sps:$4 sm:$0xff]  }
  0xfd   :  { %2647 = vmatpush2.bf16.msra.mxu0 %v4376_v2  ;;  %v4454_v2 = vld [vmem:[#allocation4 + $0x28] ss:$16 sps:$4 sm:$0xff]  }
  0xfe   :  { %2688 = vmatpush2.bf16.msra.mxu1 %v4379_v3  ;;  %2648 = vmatprep.subr.bf16.mxu0 %v4384_v4  ;;  %v4457_v3 = vld [vmem:[#allocation4 + $0x228] ss:$16 sps:$4 sm:$0xff]   ;;  %v4462_v4 = vld [vmem:[#allocation4 + $0xc] ss:$16 sps:$4 sm:$0xff]  }
  0xff   :  { %2689 = vmatprep.subr.bf16.mxu1 %v4387_v5  ;;  %v4465_v5 = vld [vmem:[#allocation4 + $0x20c] ss:$16 sps:$4 sm:$0xff]  }
 0x101   :  { %2649 = vmatpush2.bf16.msra.mxu0 %v4382_v6  ;;  %v4460_v6 = vld [vmem:[#allocation4 + $0x8] ss:$16 sps:$4 sm:$0xff]  }
 0x102   :  { %2690 = vmatpush2.bf16.msra.mxu1 %v4385_v7  ;;  %2650 = vmatprep.subr.bf16.mxu0 %v4390_v10  ;;  %v4463_v7 = vld [vmem:[#allocation4 + $0x208] ss:$16 sps:$4 sm:$0xff]   ;;  %v4468_v10 = vld [vmem:[#allocation4 + $0x1ec] ss:$16 sps:$4 sm:$0xff]  }
 0x103   :  { %2691 = vmatprep.subr.bf16.mxu1 %v4393_v11  ;;  %v4471_v11 = vld [vmem:[#allocation4 + $0x3ec] ss:$16 sps:$4 sm:$0xff]  }
 0x105   :  { %2651 = vmatpush2.bf16.msra.mxu0 %v4388_v12  ;;  %v4466_v12 = vld [vmem:[#allocation4 + $0x1e8] ss:$16 sps:$4 sm:$0xff]  }
 0x106   :  { %2692 = vmatpush2.bf16.msra.mxu1 %v4391_v13  ;;  %2652 = vmatprep.subr.bf16.mxu0 %v4396_v14  ;;  %v4469_v13 = vld [vmem:[#allocation4 + $0x3e8] ss:$16 sps:$4 sm:$0xff]   ;;  %v4474_v14 = vld [vmem:[#allocation4 + $0x1cc] ss:$16 sps:$4 sm:$0xff]  }
 0x107   :  { %2693 = vmatprep.subr.bf16.mxu1 %v4399_v15  ;;  %v4477_v15 = vld [vmem:[#allocation4 + $0x3cc] ss:$16 sps:$4 sm:$0xff]  }
 0x109   :  { %2653 = vmatpush2.bf16.msra.mxu0 %v4394_v16  ;;  %v4472_v16 = vld [vmem:[#allocation4 + $0x1c8] ss:$16 sps:$4 sm:$0xff]  }
 0x10a   :  { %2694 = vmatpush2.bf16.msra.mxu1 %v4397_v17  ;;  %2654 = vmatprep.subr.bf16.mxu0 %v4402_v18  ;;  %v4475_v17 = vld [vmem:[#allocation4 + $0x3c8] ss:$16 sps:$4 sm:$0xff]   ;;  %v4480_v18 = vld [vmem:[#allocation4 + $0x1ac] ss:$16 sps:$4 sm:$0xff]  }
 0x10b   :  { %2695 = vmatprep.subr.bf16.mxu1 %v4405_v19  ;;  %v4483_v19 = vld [vmem:[#allocation4 + $0x3ac] ss:$16 sps:$4 sm:$0xff]  }
 0x10d   :  { %2655 = vmatpush2.bf16.msra.mxu0 %v4400_v22  ;;  %v4478_v22 = vld [vmem:[#allocation4 + $0x1a8] ss:$16 sps:$4 sm:$0xff]  }
 0x10e   :  { %2696 = vmatpush2.bf16.msra.mxu1 %v4403_v23  ;;  %2656 = vmatprep.subr.bf16.mxu0 %v4408_v24  ;;  %v4481_v23 = vld [vmem:[#allocation4 + $0x3a8] ss:$16 sps:$4 sm:$0xff]   ;;  %v4486_v24 = vld [vmem:[#allocation4 + $0x18c] ss:$16 sps:$4 sm:$0xff]  }
 0x10f   :  { %2697 = vmatprep.subr.bf16.mxu1 %v4411_v25  ;;  %v4489_v25 = vld [vmem:[#allocation4 + $0x38c] ss:$16 sps:$4 sm:$0xff]  }
 0x111   :  { %2657 = vmatpush2.bf16.msra.mxu0 %v4406_v26  ;;  %v4484_v26 = vld [vmem:[#allocation4 + $0x188] ss:$16 sps:$4 sm:$0xff]  }
 0x112   :  { %2698 = vmatpush2.bf16.msra.mxu1 %v4409_v27  ;;  %2658 = vmatprep.subr.bf16.mxu0 %v4414_v28  ;;  %v4487_v27 = vld [vmem:[#allocation4 + $0x388] ss:$16 sps:$4 sm:$0xff]   ;;  %v4492_v28 = vld [vmem:[#allocation4 + $0x16c] ss:$16 sps:$4 sm:$0xff]  }
 0x113   :  { %2699 = vmatprep.subr.bf16.mxu1 %v4417_v30  ;;  %v4495_v30 = vld [vmem:[#allocation4 + $0x36c] ss:$16 sps:$4 sm:$0xff]  }
 0x115   :  { %2659 = vmatpush2.bf16.msra.mxu0 %v4412_v31  ;;  %v4490_v31 = vld [vmem:[#allocation4 + $0x168] ss:$16 sps:$4 sm:$0xff]  }
 0x116   :  { %2700 = vmatpush2.bf16.msra.mxu1 %v4415_v33  ;;  %2710 = vmatprep.subr.bf16.mxu0 %v4420_v36  ;;  %v4493_v33 = vld [vmem:[#allocation4 + $0x368] ss:$16 sps:$4 sm:$0xff]  }
 0x117   :  { %2751 = vmatprep.subr.bf16.mxu1 %v4423_v38  ;;  %v4496_v36 = vld [vmem:[#allocation4 + $0x148] ss:$16 sps:$4 sm:$0xff]  }
 0x118   :  { %2661 = vmatmul.mubr.bf16.vlgmr.msra.gmra.mxu0 %v5071_v39  ;;  %v4499_v38 = vld [vmem:[#allocation4 + $0x348] ss:$16 sps:$4 sm:$0xff]  }
 0x119   :  { %2702 = vmatmul.mubr.bf16.vlgmr.msra.gmra.mxu1 %v5073_v41  ;;  %2711 = vmatpush1.bf16.msra.mxu0 %v4418_v42  ;;  %v524_v42 = vlaneseq }
 0x11a   :  { %2752 = vmatpush1.bf16.msra.mxu1 %v4421_v43  ;;  %2712 = vmatprep.subr.bf16.mxu0 %v4426_v44  ;;  %v4504_v43 = vld [vmem:[#allocation4 + $0x12c] ss:$16 sps:$4 sm:$0xff]  }
 0x11b   :  { %2753 = vmatprep.subr.bf16.mxu1 %v4429_v45  ;;  %2742 = vmatprep.mubr.bf16.mxu0 %v5041_v49  ;;  %v4445_v49 = vld [vmem:[#allocation4 + $0x268] ss:$16 sps:$4 sm:$0xff]   ;;  %v4507_v44 = vld [vmem:[#allocation4 + $0x32c] ss:$16 sps:$4 sm:$0xff]  }
 0x11c   :  { %2783 = vmatprep.mubr.bf16.mxu1 %v5043_v52  ;;  %v4450_v52 = vld [vmem:[#allocation4 + $0x4c] ss:$16 sps:$4 sm:$0xff]   ;;  %v4502_v45 = vld [vmem:[#allocation4 + $0x128] ss:$16 sps:$4 sm:$0xff]  }
 0x11d   :  { %2713 = vmatpush1.bf16.msra.mxu0 %v4424_v46  ;;  %v4505_v46 = vld [vmem:[#allocation4 + $0x328] ss:$16 sps:$4 sm:$0xff]  }
 0x11e   :  { %2754 = vmatpush1.bf16.msra.mxu1 %v4427_v47  ;;  %2714 = vmatprep.subr.bf16.mxu0 %v4432_v48  ;;  %v5079_v47 = vshrl.u32 %v524_v42, 7  ;;  %v4510_v48 = vld [vmem:[#allocation4 + $0x10c] ss:$16 sps:$4 sm:$0xff]   ;;  %v4559_v42 = vld [vmem:[#allocation4 + $0x608] ss:$16 sps:$4 sm:$0xff]  }
 0x11f   :  { %2755 = vmatprep.subr.bf16.mxu1 %v4435_v50  ;;  %v4513_v50 = vld [vmem:[#allocation4 + $0x30c] ss:$16 sps:$4 sm:$0xff]  }
 0x121   :  { %2715 = vmatpush1.bf16.msra.mxu0 %v4430_v51  ;;  %v4508_v51 = vld [vmem:[#allocation4 + $0x108] ss:$16 sps:$4 sm:$0xff]  }
 0x122   :  { %2756 = vmatpush1.bf16.msra.mxu1 %v4433_v53  ;;  %2716 = vmatprep.subr.bf16.mxu0 %v4438_v54  ;;  %v4511_v53 = vld [vmem:[#allocation4 + $0x308] ss:$16 sps:$4 sm:$0xff]   ;;  %v522_v54 = vld [vmem:[#allocation6] sm:$0xf] }
 0x123   :  { %2757 = vmatprep.subr.bf16.mxu1 %v4441_v55  ;;  %v526_v55 = vsub.s32 0, %v5079_v47 }
 0x125   :  { %2717 = vmatpush1.bf16.msra.mxu0 %v4436_v56  ;;  %v4516_v56 = vld [vmem:[#allocation4 + $0x4ec] ss:$16 sps:$4 sm:$0xff]  }
 0x126   :  { %2758 = vmatpush1.bf16.msra.mxu1 %v4439_v57  ;;  %2718 = vmatprep.subr.bf16.mxu0 %v4444_v58  ;;  %v4519_v57 = vld [vmem:[#allocation4 + $0x6ec] ss:$16 sps:$4 sm:$0xff]   ;;  %v530_v58 = vsub.s32 1, %v5079_v47 }
 0x127   :  { %2759 = vmatprep.subr.bf16.mxu1 %v4447_v59  ;;  %v4514_v59 = vld [vmem:[#allocation4 + $0x4e8] ss:$16 sps:$4 sm:$0xff]  }
 0x129   :  { %2719 = vmatpush1.bf16.msra.mxu0 %v4442_v60  ;;  %v527_v60 = vrot.slane %v522_v54, %v526_v55 }
 0x12a   :  { %2760 = vmatpush1.bf16.msra.mxu1 %v4445_v49  ;;  %2720 = vmatprep.subr.bf16.mxu0 %v4450_v52  ;;  %v4517_v49 = vld [vmem:[#allocation4 + $0x6e8] ss:$16 sps:$4 sm:$0xff]   ;;  %v4522_v52 = vld [vmem:[#allocation4 + $0x4cc] ss:$16 sps:$4 sm:$0xff]  }
 0x12b   :  { %2761 = vmatprep.subr.bf16.mxu1 %v4453_v61  ;;  %v4525_v61 = vld [vmem:[#allocation4 + $0x6cc] ss:$16 sps:$4 sm:$0xff]  }
 0x12d   :  { %2721 = vmatpush1.bf16.msra.mxu0 %v4448_v62  ;;  %v531_v62 = vrot.slane %v522_v54, %v530_v58  ;;  %v4576_v54 = vld [vmem:[#allocation4 + $0x5ac] ss:$16 sps:$4 sm:$0xff]  }
 0x12e   :  { %2762 = vmatpush1.bf16.msra.mxu1 %v4451_v63  ;;  %2722 = vmatprep.subr.bf16.mxu0 %v4456_v0 }
 0x12f   :  { %2763 = vmatprep.subr.bf16.mxu1 %v4459_v1  ;;  %v4520_v1 = vld [vmem:[#allocation4 + $0x4c8] ss:$16 sps:$4 sm:$0xff]  }
 0x131   :  { %2723 = vmatpush1.bf16.msra.mxu0 %v4454_v2 }
 0x132   :  { %2764 = vmatpush1.bf16.msra.mxu1 %v4457_v3  ;;  %2724 = vmatprep.subr.bf16.mxu0 %v4462_v4  ;;  %v4523_v3 = vld [vmem:[#allocation4 + $0x6c8] ss:$16 sps:$4 sm:$0xff]  }
 0x133   :  { %2765 = vmatprep.subr.bf16.mxu1 %v4465_v5 }
 0x135   :  { %2725 = vmatpush1.bf16.msra.mxu0 %v4460_v6  ;;  %v4528_v6 = vld [vmem:[#allocation4 + $0x4ac] ss:$16 sps:$4 sm:$0xff]  }
 0x136   :  { %2766 = vmatpush1.bf16.msra.mxu1 %v4463_v7  ;;  %2726 = vmatprep.subr.bf16.mxu0 %v4468_v10  ;;  %v4531_v7 = vld [vmem:[#allocation4 + $0x6ac] ss:$16 sps:$4 sm:$0xff]  }
 0x137   :  { %2767 = vmatprep.subr.bf16.mxu1 %v4471_v11 }
 0x139   :  { %2727 = vmatpush2.bf16.msra.mxu0 %v4466_v12  ;;  %v4526_v12 = vld [vmem:[#allocation4 + $0x4a8] ss:$16 sps:$4 sm:$0xff]  }
 0x13a   :  { %2768 = vmatpush2.bf16.msra.mxu1 %v4469_v13  ;;  %2728 = vmatprep.subr.bf16.mxu0 %v4474_v14  ;;  %v4529_v13 = vld [vmem:[#allocation4 + $0x6a8] ss:$16 sps:$4 sm:$0xff]   ;;  %v4534_v14 = vld [vmem:[#allocation4 + $0x48c] ss:$16 sps:$4 sm:$0xff]  }
 0x13b   :  { %2769 = vmatprep.subr.bf16.mxu1 %v4477_v15 }
 0x13d   :  { %2729 = vmatpush2.bf16.msra.mxu0 %v4472_v16 }
 0x13e   :  { %2770 = vmatpush2.bf16.msra.mxu1 %v4475_v17  ;;  %2730 = vmatprep.subr.bf16.mxu0 %v4480_v18  ;;  %v4537_v18 = vld [vmem:[#allocation4 + $0x68c] ss:$16 sps:$4 sm:$0xff]  }
 0x13f   :  { %2771 = vmatprep.subr.bf16.mxu1 %v4483_v19  ;;  %v4532_v19 = vld [vmem:[#allocation4 + $0x488] ss:$16 sps:$4 sm:$0xff]  }
 0x141   :  { %2731 = vmatpush2.bf16.msra.mxu0 %v4478_v22  ;;  %v4535_v22 = vld [vmem:[#allocation4 + $0x688] ss:$16 sps:$4 sm:$0xff]  }
 0x142   :  { %2772 = vmatpush2.bf16.msra.mxu1 %v4481_v23  ;;  %2732 = vmatprep.subr.bf16.mxu0 %v4486_v24  ;;  %v4540_v23 = vld [vmem:[#allocation4 + $0x46c] ss:$16 sps:$4 sm:$0xff]   ;;  %v4541_v24 = vld [vmem:[#allocation4 + $0x668] ss:$16 sps:$4 sm:$0xff]  }
 0x143   :  { %2773 = vmatprep.subr.bf16.mxu1 %v4489_v25  ;;  %v4546_v25 = vld [vmem:[#allocation4 + $0x44c] ss:$16 sps:$4 sm:$0xff]  }
 0x145   :  { %2733 = vmatpush2.bf16.msra.mxu0 %v4484_v26  ;;  %v4549_v26 = vld [vmem:[#allocation4 + $0x64c] ss:$16 sps:$4 sm:$0xff]  }
 0x146   :  { %2774 = vmatpush2.bf16.msra.mxu1 %v4487_v27  ;;  %2734 = vmatprep.subr.bf16.mxu0 %v4492_v28  ;;  %v4544_v27 = vld [vmem:[#allocation4 + $0x448] ss:$16 sps:$4 sm:$0xff]  }
 0x147   :  { %2775 = vmatprep.subr.bf16.mxu1 %v4495_v30  ;;  %v4547_v28 = vld [vmem:[#allocation4 + $0x648] ss:$16 sps:$4 sm:$0xff]   ;;  %v4552_v30 = vld [vmem:[#allocation4 + $0x42c] ss:$16 sps:$4 sm:$0xff]  }
 0x149   :  { %2735 = vmatpush2.bf16.msra.mxu0 %v4490_v31  ;;  %v4555_v31 = vld [vmem:[#allocation4 + $0x62c] ss:$16 sps:$4 sm:$0xff]  }
 0x14a   :  { %2776 = vmatpush2.bf16.msra.mxu1 %v4493_v33  ;;  %2736 = vmatprep.subr.bf16.mxu0 %v4498_v34  ;;  %v4550_v33 = vld [vmem:[#allocation4 + $0x428] ss:$16 sps:$4 sm:$0xff]  }
 0x14b   :  { %2777 = vmatprep.subr.bf16.mxu1 %v4501_v35  ;;  %v4553_v34 = vld [vmem:[#allocation4 + $0x628] ss:$16 sps:$4 sm:$0xff]   ;;  %v4558_v35 = vld [vmem:[#allocation4 + $0x40c] ss:$16 sps:$4 sm:$0xff]  }
 0x14d   :  { %2737 = vmatpush2.bf16.msra.mxu0 %v4496_v36  ;;  %v4561_v36 = vld [vmem:[#allocation4 + $0x60c] ss:$16 sps:$4 sm:$0xff]  }
 0x14e   :  { %2778 = vmatpush2.bf16.msra.mxu1 %v4499_v38  ;;  %2738 = vmatprep.subr.bf16.mxu0 %v4504_v43  ;;  %v4556_v38 = vld [vmem:[#allocation4 + $0x408] ss:$16 sps:$4 sm:$0xff]   ;;  %v4564_v43 = vld [vmem:[#allocation4 + $0x5ec] ss:$16 sps:$4 sm:$0xff]  }
 0x14f   :  { %2779 = vmatprep.subr.bf16.mxu1 %v4507_v44  ;;  %v4567_v44 = vld [vmem:[#allocation4 + $0x7ec] ss:$16 sps:$4 sm:$0xff]  }
 0x151   :  { %2739 = vmatpush2.bf16.msra.mxu0 %v4502_v45  ;;  %v4562_v45 = vld [vmem:[#allocation4 + $0x5e8] ss:$16 sps:$4 sm:$0xff]  }
 0x152   :  { %2780 = vmatpush2.bf16.msra.mxu1 %v4505_v46  ;;  %2740 = vmatprep.subr.bf16.mxu0 %v4510_v48  ;;  %v4565_v46 = vld [vmem:[#allocation4 + $0x7e8] ss:$16 sps:$4 sm:$0xff]   ;;  %v4570_v48 = vld [vmem:[#allocation4 + $0x5cc] ss:$16 sps:$4 sm:$0xff]  }
 0x153   :  { %2781 = vmatprep.subr.bf16.mxu1 %v4513_v50  ;;  %v4573_v50 = vld [vmem:[#allocation4 + $0x7cc] ss:$16 sps:$4 sm:$0xff]  }
 0x155   :  { %2741 = vmatpush2.bf16.msra.mxu0 %v4508_v51  ;;  %v4568_v51 = vld [vmem:[#allocation4 + $0x5c8] ss:$16 sps:$4 sm:$0xff]  }
 0x156   :  { %2782 = vmatpush2.bf16.msra.mxu1 %v4511_v53  ;;  %2792 = vmatprep.subr.bf16.mxu0 %v4516_v56  ;;  %v4571_v53 = vld [vmem:[#allocation4 + $0x7c8] ss:$16 sps:$4 sm:$0xff]   ;;  %v4579_v56 = vld [vmem:[#allocation4 + $0x7ac] ss:$16 sps:$4 sm:$0xff]  }
 0x157   :  { %2833 = vmatprep.subr.bf16.mxu1 %v4519_v57  ;;  %v4574_v57 = vld [vmem:[#allocation4 + $0x5a8] ss:$16 sps:$4 sm:$0xff]  }
 0x158   :  { %v2498_v63 = vpop.f32.mrf.mxu0  ;;  %2743 = vmatmul.mubr.bf16.vlgmr.msra.gmra.mxu0 %v5047_v8 }
 0x159   :  { %v2539_v0 = vpop.f32.mrf.mxu1  ;;  %2784 = vmatmul.mubr.bf16.vlgmr.msra.gmra.mxu1 %v5049_v9  ;;  %v2499_v2 = vadd.f32 %v2498_v63, %v527_v60  ;;  %2793 = vmatpush1.bf16.msra.mxu0 %v4514_v59  ;;  %v4577_v59 = vld [vmem:[#allocation4 + $0x7a8] ss:$16 sps:$4 sm:$0xff]   ;;  %v4582_v60 = vld [vmem:[#allocation4 + $0x58c] ss:$16 sps:$4 sm:$0xff]  }
 0x15a   :  { %2834 = vmatpush1.bf16.msra.mxu1 %v4517_v49  ;;  %v2500_v4 = vpop.f32.mrf.mxu0  ;;  %2794 = vmatprep.subr.bf16.mxu0 %v4522_v52  ;;  %v4585_v49 = vld [vmem:[#allocation4 + $0x78c] ss:$16 sps:$4 sm:$0xff]   ;;  %v4580_v52 = vld [vmem:[#allocation4 + $0x588] ss:$16 sps:$4 sm:$0xff]  }
 0x15b   :  { %v2541_v5 = vpop.f32.mrf.mxu1  ;;  %2835 = vmatprep.subr.bf16.mxu1 %v4525_v61  ;;  %v5089_v10 = vadd.f32 %v2539_v0, %v2499_v2  ;;  %v2501_v11 = vadd.f32 %v2500_v4, %v531_v62  ;;  %2824 = vmatprep.mubr.bf16.mxu0 %v5053_v37  ;;  %v4543_v37 = vld [vmem:[#allocation4 + $0x66c] ss:$16 sps:$4 sm:$0xff]   ;;  %v4583_v61 = vld [vmem:[#allocation4 + $0x788] ss:$16 sps:$4 sm:$0xff]  }
 0x15c   :  { %2865 = vmatprep.mubr.bf16.mxu1 %v5055_v40  ;;  %v2502_v8 = vpop.f32.mrf.mxu0  ;;  %v4538_v40 = vld [vmem:[#allocation4 + $0x468] ss:$16 sps:$4 sm:$0xff]   ;;  %v4588_v62 = vld [vmem:[#allocation4 + $0x56c] ss:$16 sps:$4 sm:$0xff]  }
 0x15d   :  { %v2543_v9 = vpop.f32.mrf.mxu1  ;;  %v5093_v15 = vadd.f32 %v2541_v5, %v2501_v11  ;;  %2795 = vmatpush1.bf16.msra.mxu0 %v4520_v1  ;;  %v4591_v63 = vld [vmem:[#allocation4 + $0x76c] ss:$16 sps:$4 sm:$0xff]   ;;  %v4586_v0 = vld [vmem:[#allocation4 + $0x568] ss:$16 sps:$4 sm:$0xff]  }
 0x15e   :  { %2836 = vmatpush1.bf16.msra.mxu1 %v4523_v3  ;;  %v2503_v16 = vpop.f32.mrf.mxu0  ;;  %2796 = vmatprep.subr.bf16.mxu0 %v4528_v6  ;;  %v4589_v1 = vld [vmem:[#allocation4 + $0x768] ss:$16 sps:$4 sm:$0xff]   ;;  %v4594_v2 = vld [vmem:[#allocation4 + $0x54c] ss:$16 sps:$4 sm:$0xff]  }
 0x15f   :  { %v2544_v17 = vpop.f32.mrf.mxu1  ;;  %2837 = vmatprep.subr.bf16.mxu1 %v4531_v7  ;;  %v4597_v3 = vld [vmem:[#allocation4 + $0x74c] ss:$16 sps:$4 sm:$0xff]   ;;  %v4592_v4 = vld [vmem:[#allocation4 + $0x548] ss:$16 sps:$4 sm:$0xff]  }
 0x160   :  { %v4595_v5 = vld [vmem:[#allocation4 + $0x748] ss:$16 sps:$4 sm:$0xff]   ;;  %v4600_v6 = vld [vmem:[#allocation4 + $0x52c] ss:$16 sps:$4 sm:$0xff]  }
 0x161   :  { %2797 = vmatpush1.bf16.msra.mxu0 %v4526_v12  ;;  %v4603_v7 = vld [vmem:[#allocation4 + $0x72c] ss:$16 sps:$4 sm:$0xff]   ;;  %v4598_v11 = vld [vmem:[#allocation4 + $0x528] ss:$16 sps:$4 sm:$0xff]  }
 0x162   :  { %2838 = vmatpush1.bf16.msra.mxu1 %v4529_v13  ;;  %2798 = vmatprep.subr.bf16.mxu0 %v4534_v14  ;;  %v4601_v12 = vld [vmem:[#allocation4 + $0x728] ss:$16 sps:$4 sm:$0xff]   ;;  %v4606_v13 = vld [vmem:[#allocation4 + $0x50c] ss:$16 sps:$4 sm:$0xff]  }
 0x163   :  { %2839 = vmatprep.subr.bf16.mxu1 %v4537_v18  ;;  %v4609_v8 = vld [vmem:[#allocation4 + $0x70c] ss:$16 sps:$4 sm:$0xff]   ;;  %v4604_v9 = vld [vmem:[#allocation4 + $0x508] ss:$16 sps:$4 sm:$0xff]  }
 0x164   :  { %v4607_v14 = vld [vmem:[#allocation4 + $0x708] ss:$16 sps:$4 sm:$0xff]   ;;  %v4612_v16 = vld [vmem:[#allocation4 + $0x8ec] ss:$16 sps:$4 sm:$0xff]  }
 0x165   :  { %2799 = vmatpush1.bf16.msra.mxu0 %v4532_v19  ;;  %v4615_v17 = vld [vmem:[#allocation4 + $0xaec] ss:$16 sps:$4 sm:$0xff]   ;;  %v4610_v18 = vld [vmem:[#allocation4 + $0x8e8] ss:$16 sps:$4 sm:$0xff]  }
 0x166   :  { %2840 = vmatpush1.bf16.msra.mxu1 %v4535_v22  ;;  %2800 = vmatprep.subr.bf16.mxu0 %v4540_v23  ;;  %v4613_v19 = vld [vmem:[#allocation4 + $0xae8] ss:$16 sps:$4 sm:$0xff]   ;;  %v4618_v22 = vld [vmem:[#allocation4 + $0x8cc] ss:$16 sps:$4 sm:$0xff]  }
 0x167   :  { %2841 = vmatprep.subr.bf16.mxu1 %v4543_v37  ;;  %v4621_v23 = vld [vmem:[#allocation4 + $0xacc] ss:$16 sps:$4 sm:$0xff]  }
 0x169   :  { %2801 = vmatpush1.bf16.msra.mxu0 %v4538_v40 }
 0x16a   :  { %2842 = vmatpush1.bf16.msra.mxu1 %v4541_v24  ;;  %2802 = vmatprep.subr.bf16.mxu0 %v4546_v25  ;;  %v4616_v25 = vld [vmem:[#allocation4 + $0x8c8] ss:$16 sps:$4 sm:$0xff]  }
 0x16b   :  { %2843 = vmatprep.subr.bf16.mxu1 %v4549_v26  ;;  %v4619_v26 = vld [vmem:[#allocation4 + $0xac8] ss:$16 sps:$4 sm:$0xff]  }
 0x16d   :  { %2803 = vmatpush1.bf16.msra.mxu0 %v4544_v27 }
 0x16e   :  { %2844 = vmatpush1.bf16.msra.mxu1 %v4547_v28  ;;  %2804 = vmatprep.subr.bf16.mxu0 %v4552_v30  ;;  %v4624_v30 = vld [vmem:[#allocation4 + $0x8ac] ss:$16 sps:$4 sm:$0xff]  }
 0x16f   :  { %2845 = vmatprep.subr.bf16.mxu1 %v4555_v31  ;;  %v4627_v31 = vld [vmem:[#allocation4 + $0xaac] ss:$16 sps:$4 sm:$0xff]  }
 0x171   :  { %2805 = vmatpush1.bf16.msra.mxu0 %v4550_v33 }
 0x172   :  { %2846 = vmatpush1.bf16.msra.mxu1 %v4553_v34  ;;  %2806 = vmatprep.subr.bf16.mxu0 %v4558_v35  ;;  %v4625_v34 = vld [vmem:[#allocation4 + $0xaa8] ss:$16 sps:$4 sm:$0xff]  }
 0x173   :  { %2847 = vmatprep.subr.bf16.mxu1 %v4561_v36 }
 0x175   :  { %2807 = vmatpush1.bf16.msra.mxu0 %v4556_v38  ;;  %v4630_v38 = vld [vmem:[#allocation4 + $0x88c] ss:$16 sps:$4 sm:$0xff]  }
 0x176   :  { %2848 = vmatpush1.bf16.msra.mxu1 %v4559_v42  ;;  %2808 = vmatprep.subr.bf16.mxu0 %v4564_v43  ;;  %v4633_v42 = vld [vmem:[#allocation4 + $0xa8c] ss:$16 sps:$4 sm:$0xff]   ;;  %v4628_v43 = vld [vmem:[#allocation4 + $0x888] ss:$16 sps:$4 sm:$0xff]  }
 0x177   :  { %2849 = vmatprep.subr.bf16.mxu1 %v4567_v44  ;;  %v4631_v44 = vld [vmem:[#allocation4 + $0xa88] ss:$16 sps:$4 sm:$0xff]  }
 0x179   :  { %2809 = vmatpush2.bf16.msra.mxu0 %v4562_v45  ;;  %v4634_v45 = vld [vmem:[#allocation4 + $0x868] ss:$16 sps:$4 sm:$0xff]  }
 0x17a   :  { %2850 = vmatpush2.bf16.msra.mxu1 %v4565_v46  ;;  %2810 = vmatprep.subr.bf16.mxu0 %v4570_v48  ;;  %v4637_v46 = vld [vmem:[#allocation4 + $0xa68] ss:$16 sps:$4 sm:$0xff]   ;;  %v4642_v48 = vld [vmem:[#allocation4 + $0x84c] ss:$16 sps:$4 sm:$0xff]  }
 0x17b   :  { %2851 = vmatprep.subr.bf16.mxu1 %v4573_v50  ;;  %v4645_v50 = vld [vmem:[#allocation4 + $0xa4c] ss:$16 sps:$4 sm:$0xff]  }
 0x17d   :  { %2811 = vmatpush2.bf16.msra.mxu0 %v4568_v51  ;;  %v4640_v51 = vld [vmem:[#allocation4 + $0x848] ss:$16 sps:$4 sm:$0xff]  }
 0x17e   :  { %2852 = vmatpush2.bf16.msra.mxu1 %v4571_v53  ;;  %2812 = vmatprep.subr.bf16.mxu0 %v4576_v54  ;;  %v4643_v53 = vld [vmem:[#allocation4 + $0xa48] ss:$16 sps:$4 sm:$0xff]   ;;  %v4648_v54 = vld [vmem:[#allocation4 + $0x82c] ss:$16 sps:$4 sm:$0xff]  }
 0x17f   :  { %2853 = vmatprep.subr.bf16.mxu1 %v4579_v56  ;;  %v4651_v56 = vld [vmem:[#allocation4 + $0xa2c] ss:$16 sps:$4 sm:$0xff]  }
 0x181   :  { %2813 = vmatpush2.bf16.msra.mxu0 %v4574_v57  ;;  %v4646_v57 = vld [vmem:[#allocation4 + $0x828] ss:$16 sps:$4 sm:$0xff]  }
 0x182   :  { %2854 = vmatpush2.bf16.msra.mxu1 %v4577_v59  ;;  %2814 = vmatprep.subr.bf16.mxu0 %v4582_v60  ;;  %v4649_v59 = vld [vmem:[#allocation4 + $0xa28] ss:$16 sps:$4 sm:$0xff]   ;;  %v4654_v60 = vld [vmem:[#allocation4 + $0x80c] ss:$16 sps:$4 sm:$0xff]  }
 0x183   :  { %2855 = vmatprep.subr.bf16.mxu1 %v4585_v49  ;;  %v4657_v49 = vld [vmem:[#allocation4 + $0xa0c] ss:$16 sps:$4 sm:$0xff]  }
 0x185   :  { %2815 = vmatpush2.bf16.msra.mxu0 %v4580_v52  ;;  %v4652_v52 = vld [vmem:[#allocation4 + $0x808] ss:$16 sps:$4 sm:$0xff]  }
 0x186   :  { %2856 = vmatpush2.bf16.msra.mxu1 %v4583_v61  ;;  %2816 = vmatprep.subr.bf16.mxu0 %v4588_v62  ;;  %v4655_v61 = vld [vmem:[#allocation4 + $0xa08] ss:$16 sps:$4 sm:$0xff]   ;;  %v4660_v62 = vld [vmem:[#allocation4 + $0x9ec] ss:$16 sps:$4 sm:$0xff]  }
 0x187   :  { %2857 = vmatprep.subr.bf16.mxu1 %v4591_v63  ;;  %v4663_v63 = vld [vmem:[#allocation4 + $0xbec] ss:$16 sps:$4 sm:$0xff]  }
 0x189   :  { %2817 = vmatpush2.bf16.msra.mxu0 %v4586_v0  ;;  %v4658_v0 = vld [vmem:[#allocation4 + $0x9e8] ss:$16 sps:$4 sm:$0xff]  }
 0x18a   :  { %2858 = vmatpush2.bf16.msra.mxu1 %v4589_v1  ;;  %2818 = vmatprep.subr.bf16.mxu0 %v4594_v2  ;;  %v4661_v1 = vld [vmem:[#allocation4 + $0xbe8] ss:$16 sps:$4 sm:$0xff]   ;;  %v4666_v2 = vld [vmem:[#allocation4 + $0x9cc] ss:$16 sps:$4 sm:$0xff]  }
 0x18b   :  { %2859 = vmatprep.subr.bf16.mxu1 %v4597_v3  ;;  %v4669_v3 = vld [vmem:[#allocation4 + $0xbcc] ss:$16 sps:$4 sm:$0xff]  }
 0x18d   :  { %2819 = vmatpush2.bf16.msra.mxu0 %v4592_v4  ;;  %v4664_v4 = vld [vmem:[#allocation4 + $0x9c8] ss:$16 sps:$4 sm:$0xff]  }
 0x18e   :  { %2860 = vmatpush2.bf16.msra.mxu1 %v4595_v5  ;;  %2820 = vmatprep.subr.bf16.mxu0 %v4600_v6  ;;  %v4667_v5 = vld [vmem:[#allocation4 + $0xbc8] ss:$16 sps:$4 sm:$0xff]   ;;  %v4672_v6 = vld [vmem:[#allocation4 + $0x9ac] ss:$16 sps:$4 sm:$0xff]  }
 0x18f   :  { %2861 = vmatprep.subr.bf16.mxu1 %v4603_v7  ;;  %v4675_v7 = vld [vmem:[#allocation4 + $0xbac] ss:$16 sps:$4 sm:$0xff]  }
 0x191   :  { %2821 = vmatpush2.bf16.msra.mxu0 %v4598_v11  ;;  %v4670_v11 = vld [vmem:[#allocation4 + $0x9a8] ss:$16 sps:$4 sm:$0xff]  }
 0x192   :  { %2862 = vmatpush2.bf16.msra.mxu1 %v4601_v12  ;;  %2822 = vmatprep.subr.bf16.mxu0 %v4606_v13  ;;  %v4673_v12 = vld [vmem:[#allocation4 + $0xba8] ss:$16 sps:$4 sm:$0xff]   ;;  %v4678_v13 = vld [vmem:[#allocation4 + $0x98c] ss:$16 sps:$4 sm:$0xff]  }
 0x193   :  { %2863 = vmatprep.subr.bf16.mxu1 %v4609_v8  ;;  %v4681_v8 = vld [vmem:[#allocation4 + $0xb8c] ss:$16 sps:$4 sm:$0xff]  }
 0x195   :  { %2823 = vmatpush2.bf16.msra.mxu0 %v4604_v9  ;;  %v4676_v9 = vld [vmem:[#allocation4 + $0x988] ss:$16 sps:$4 sm:$0xff]  }
 0x196   :  { %2864 = vmatpush2.bf16.msra.mxu1 %v4607_v14  ;;  %2874 = vmatprep.subr.bf16.mxu0 %v4612_v16  ;;  %v4679_v14 = vld [vmem:[#allocation4 + $0xb88] ss:$16 sps:$4 sm:$0xff]   ;;  %v4684_v16 = vld [vmem:[#allocation4 + $0x96c] ss:$16 sps:$4 sm:$0xff]  }
 0x197   :  { %2915 = vmatprep.subr.bf16.mxu1 %v4615_v17  ;;  %v4687_v17 = vld [vmem:[#allocation4 + $0xb6c] ss:$16 sps:$4 sm:$0xff]  }
 0x198   :  { %v2580_v37 = vpop.f32.mrf.mxu0  ;;  %2825 = vmatmul.mubr.bf16.vlgmr.msra.gmra.mxu0 %v5059_v20 }
 0x199   :  { %v2621_v40 = vpop.f32.mrf.mxu1  ;;  %2866 = vmatmul.mubr.bf16.vlgmr.msra.gmra.mxu1 %v5061_v21  ;;  %v2581_v24 = vadd.f32 %v2580_v37, %v5089_v10  ;;  %2875 = vmatpush1.bf16.msra.mxu0 %v4610_v18  ;;  %v4622_v10 = vld [vmem:[#allocation4 + $0x8a8] ss:$16 sps:$4 sm:$0xff]  }
 0x19a   :  { %2916 = vmatpush1.bf16.msra.mxu1 %v4613_v19  ;;  %v5098_v27 = vpop.f32.mrf.mxu0  ;;  %2876 = vmatprep.subr.bf16.mxu0 %v4618_v22  ;;  %v4682_v18 = vld [vmem:[#allocation4 + $0x968] ss:$16 sps:$4 sm:$0xff]   ;;  %v4690_v22 = vld [vmem:[#allocation4 + $0x94c] ss:$16 sps:$4 sm:$0xff]  }
 0x19b   :  { %v5100_v28 = vpop.f32.mrf.mxu1  ;;  %2917 = vmatprep.subr.bf16.mxu1 %v4621_v23  ;;  %v5102_v33 = vadd.f32 %v2621_v40, %v2581_v24  ;;  %2906 = vmatprep.mubr.bf16.mxu0 %v5065_v29  ;;  %v4636_v29 = vld [vmem:[#allocation4 + $0x86c] ss:$16 sps:$4 sm:$0xff]   ;;  %v4685_v19 = vld [vmem:[#allocation4 + $0xb68] ss:$16 sps:$4 sm:$0xff]  }
 0x19c   :  { %2947 = vmatprep.mubr.bf16.mxu1 %v5067_v32  ;;  %v2584_v20 = vpop.f32.mrf.mxu0  ;;  %v4639_v32 = vld [vmem:[#allocation4 + $0xa6c] ss:$16 sps:$4 sm:$0xff]   ;;  %v4688_v37 = vld [vmem:[#allocation4 + $0x948] ss:$16 sps:$4 sm:$0xff]  }
 0x19d   :  { %v2625_v21 = vpop.f32.mrf.mxu1  ;;  %2877 = vmatpush1.bf16.msra.mxu0 %v4616_v25  ;;  %v4693_v23 = vld [vmem:[#allocation4 + $0xb4c] ss:$16 sps:$4 sm:$0xff]   ;;  %v4691_v40 = vld [vmem:[#allocation4 + $0xb48] ss:$16 sps:$4 sm:$0xff]  }
 0x19e   :  { %2918 = vmatpush1.bf16.msra.mxu1 %v4619_v26  ;;  %v2585_v35 = vpop.f32.mrf.mxu0  ;;  %2878 = vmatprep.subr.bf16.mxu0 %v4624_v30  ;;  %v4696_v24 = vld [vmem:[#allocation4 + $0x92c] ss:$16 sps:$4 sm:$0xff]   ;;  %v4694_v26 = vld [vmem:[#allocation4 + $0x928] ss:$16 sps:$4 sm:$0xff]  }
 0x19f   :  { %v2626_v36 = vpop.f32.mrf.mxu1  ;;  %2919 = vmatprep.subr.bf16.mxu1 %v4627_v31  ;;  %v4699_v25 = vld [vmem:[#allocation4 + $0xb2c] ss:$16 sps:$4 sm:$0xff]   ;;  %v4697_v30 = vld [vmem:[#allocation4 + $0xb28] ss:$16 sps:$4 sm:$0xff]   ;;  %v2583_v35 = vadd.f32 %v5098_v27, %v5093_v15 }
 0x1a0   :  { %v4702_v31 = vld [vmem:[#allocation4 + $0x90c] ss:$16 sps:$4 sm:$0xff]   ;;  %v4700_v21 = vld [vmem:[#allocation4 + $0x908] ss:$16 sps:$4 sm:$0xff]  }
 0x1a1   :  { %2879 = vmatpush1.bf16.msra.mxu0 %v4622_v10  ;;  %v4705_v20 = vld [vmem:[#allocation4 + $0xb0c] ss:$16 sps:$4 sm:$0xff]   ;;  %v4703_v10 = vld [vmem:[#allocation4 + $0xb08] ss:$16 sps:$4 sm:$0xff]  }
 0x1a2   :  { %2920 = vmatpush1.bf16.msra.mxu1 %v4625_v34  ;;  %2880 = vmatprep.subr.bf16.mxu0 %v4630_v38  ;;  %v4708_v34 = vld [vmem:[#allocation7 + $0x74] ss:$8 sps:$4 sm:$0xff]   ;;  %v4706_v36 = vld [vmem:[#allocation7 + $0x70] ss:$8 sps:$4 sm:$0xff]   ;;  %v4711_v38 = vld [vmem:[#allocation7 + $0x64] ss:$8 sps:$4 sm:$0xff]  }
 0x1a3   :  { %2921 = vmatprep.subr.bf16.mxu1 %v4633_v42  ;;  %v4714_v15 = vld [vmem:[#allocation7 + $0x54] ss:$8 sps:$4 sm:$0xff]  }
 0x1a5   :  { %2881 = vmatpush1.bf16.msra.mxu0 %v4628_v43 }
 0x1a6   :  { %2922 = vmatpush1.bf16.msra.mxu1 %v4631_v44  ;;  %2882 = vmatprep.subr.bf16.mxu0 %v4636_v29  ;;  %v2624_v44 = vadd.f32 %v5100_v28, %v2583_v35  ;;  %v4709_v29 = vld [vmem:[#allocation7 + $0x60] ss:$8 sps:$4 sm:$0xff]   ;;  %v4759_v28 = vld [vmem:[#allocation7 + $0x164] ss:$8 sps:$4 sm:$0xff]   ;;  %v4784_v35 = vld [vmem:[#allocation7 + $0x1d0] ss:$8 sps:$4 sm:$0xff]  }
 0x1a7   :  { %2923 = vmatprep.subr.bf16.mxu1 %v4639_v32 }
 0x1a9   :  { %2883 = vmatpush1.bf16.msra.mxu0 %v4634_v45 }
 0x1aa   :  { %2924 = vmatpush1.bf16.msra.mxu1 %v4637_v46  ;;  %2884 = vmatprep.subr.bf16.mxu0 %v4642_v48 }
 0x1ab   :  { %2925 = vmatprep.subr.bf16.mxu1 %v4645_v50 }
 0x1ad   :  { %2885 = vmatpush1.bf16.msra.mxu0 %v4640_v51  ;;  %v4712_v51 = vld [vmem:[#allocation7 + $0x50] ss:$8 sps:$4 sm:$0xff]  }
 0x1ae   :  { %2926 = vmatpush1.bf16.msra.mxu1 %v4643_v53  ;;  %2886 = vmatprep.subr.bf16.mxu0 %v4648_v54 }
 0x1af   :  { %2927 = vmatprep.subr.bf16.mxu1 %v4651_v56  ;;  %v4754_v56 = vld [vmem:[#allocation7 + $0x170] ss:$8 sps:$4 sm:$0xff]  }
 0x1b1   :  { %2887 = vmatpush1.bf16.msra.mxu0 %v4646_v57 }
 0x1b2   :  { %2928 = vmatpush1.bf16.msra.mxu1 %v4649_v59  ;;  %2888 = vmatprep.subr.bf16.mxu0 %v4654_v60  ;;  %v4715_v60 = vld [vmem:[#allocation7 + $0x40] ss:$8 sps:$4 sm:$0xff]  }
 0x1b3   :  { %2929 = vmatprep.subr.bf16.mxu1 %v4657_v49  ;;  %v4757_v49 = vld [vmem:[#allocation7 + $0x160] ss:$8 sps:$4 sm:$0xff]  }
 0x1b5   :  { %2889 = vmatpush1.bf16.msra.mxu0 %v4652_v52  ;;  %v4720_v52 = vld [vmem:[#allocation7 + $0x34] ss:$8 sps:$4 sm:$0xff]  }
 0x1b6   :  { %2930 = vmatpush1.bf16.msra.mxu1 %v4655_v61  ;;  %2890 = vmatprep.subr.bf16.mxu0 %v4660_v62  ;;  %v4762_v61 = vld [vmem:[#allocation7 + $0x154] ss:$8 sps:$4 sm:$0xff]   ;;  %v4718_v62 = vld [vmem:[#allocation7 + $0x30] ss:$8 sps:$4 sm:$0xff]  }
 0x1b7   :  { %2931 = vmatprep.subr.bf16.mxu1 %v4663_v63  ;;  %v4760_v63 = vld [vmem:[#allocation7 + $0x150] ss:$8 sps:$4 sm:$0xff]  }
 0x1b9   :  { %2891 = vmatpush2.bf16.msra.mxu0 %v4658_v0  ;;  %v4723_v0 = vld [vmem:[#allocation7 + $0x24] ss:$8 sps:$4 sm:$0xff]  }
 0x1ba   :  { %2932 = vmatpush2.bf16.msra.mxu1 %v4661_v1  ;;  %2892 = vmatprep.subr.bf16.mxu0 %v4666_v2  ;;  %v4765_v1 = vld [vmem:[#allocation7 + $0x144] ss:$8 sps:$4 sm:$0xff]   ;;  %v4721_v2 = vld [vmem:[#allocation7 + $0x20] ss:$8 sps:$4 sm:$0xff]  }
 0x1bb   :  { %2933 = vmatprep.subr.bf16.mxu1 %v4669_v3  ;;  %v4763_v3 = vld [vmem:[#allocation7 + $0x140] ss:$8 sps:$4 sm:$0xff]  }
 0x1bd   :  { %2893 = vmatpush2.bf16.msra.mxu0 %v4664_v4  ;;  %v4726_v4 = vld [vmem:[#allocation7 + $0x14] ss:$8 sps:$4 sm:$0xff]  }
 0x1be   :  { %2934 = vmatpush2.bf16.msra.mxu1 %v4667_v5  ;;  %2894 = vmatprep.subr.bf16.mxu0 %v4672_v6  ;;  %v4768_v5 = vld [vmem:[#allocation7 + $0x134] ss:$8 sps:$4 sm:$0xff]   ;;  %v4724_v6 = vld [vmem:[#allocation7 + $0x10] ss:$8 sps:$4 sm:$0xff]  }
 0x1bf   :  { %2935 = vmatprep.subr.bf16.mxu1 %v4675_v7  ;;  %v4766_v7 = vld [vmem:[#allocation7 + $0x130] ss:$8 sps:$4 sm:$0xff]  }
 0x1c1   :  { %2895 = vmatpush2.bf16.msra.mxu0 %v4670_v11  ;;  %v4729_v11 = vld [vmem:[#allocation7 + $0x4] ss:$8 sps:$4 sm:$0xff]  }
 0x1c2   :  { %2936 = vmatpush2.bf16.msra.mxu1 %v4673_v12  ;;  %2896 = vmatprep.subr.bf16.mxu0 %v4678_v13  ;;  %v4771_v12 = vld [vmem:[#allocation7 + $0x124] ss:$8 sps:$4 sm:$0xff]   ;;  %v4727_v13 = vld [vmem:[#allocation7] ss:$8 sps:$4 sm:$0xff]  }
 0x1c3   :  { %2937 = vmatprep.subr.bf16.mxu1 %v4681_v8  ;;  %v4769_v8 = vld [vmem:[#allocation7 + $0x120] ss:$8 sps:$4 sm:$0xff]  }
 0x1c5   :  { %2897 = vmatpush2.bf16.msra.mxu0 %v4676_v9  ;;  %v4732_v9 = vld [vmem:[#allocation7 + $0xf4] ss:$8 sps:$4 sm:$0xff]  }
 0x1c6   :  { %2938 = vmatpush2.bf16.msra.mxu1 %v4679_v14  ;;  %2898 = vmatprep.subr.bf16.mxu0 %v4684_v16  ;;  %v4774_v14 = vld [vmem:[#allocation7 + $0x114] ss:$8 sps:$4 sm:$0xff]   ;;  %v4730_v16 = vld [vmem:[#allocation7 + $0xf0] ss:$8 sps:$4 sm:$0xff]  }
 0x1c7   :  { %2939 = vmatprep.subr.bf16.mxu1 %v4687_v17  ;;  %v4772_v17 = vld [vmem:[#allocation7 + $0x110] ss:$8 sps:$4 sm:$0xff]  }
 0x1c9   :  { %2899 = vmatpush2.bf16.msra.mxu0 %v4682_v18  ;;  %v4735_v18 = vld [vmem:[#allocation7 + $0xe4] ss:$8 sps:$4 sm:$0xff]  }
 0x1ca   :  { %2940 = vmatpush2.bf16.msra.mxu1 %v4685_v19  ;;  %2900 = vmatprep.subr.bf16.mxu0 %v4690_v22  ;;  %v4777_v19 = vld [vmem:[#allocation7 + $0x104] ss:$8 sps:$4 sm:$0xff]   ;;  %v4733_v22 = vld [vmem:[#allocation7 + $0xe0] ss:$8 sps:$4 sm:$0xff]  }
 0x1cb   :  { %2941 = vmatprep.subr.bf16.mxu1 %v4693_v23  ;;  %v4775_v23 = vld [vmem:[#allocation7 + $0x100] ss:$8 sps:$4 sm:$0xff]  }
 0x1cd   :  { %2901 = vmatpush2.bf16.msra.mxu0 %v4688_v37  ;;  %v4738_v37 = vld [vmem:[#allocation7 + $0xd4] ss:$8 sps:$4 sm:$0xff]  }
 0x1ce   :  { %2942 = vmatpush2.bf16.msra.mxu1 %v4691_v40  ;;  %2902 = vmatprep.subr.bf16.mxu0 %v4696_v24  ;;  %v4780_v40 = vld [vmem:[#allocation7 + $0x1f4] ss:$8 sps:$4 sm:$0xff]   ;;  %v4736_v24 = vld [vmem:[#allocation7 + $0xd0] ss:$8 sps:$4 sm:$0xff]  }
 0x1cf   :  { %2943 = vmatprep.subr.bf16.mxu1 %v4699_v25  ;;  %v4778_v25 = vld [vmem:[#allocation7 + $0x1f0] ss:$8 sps:$4 sm:$0xff]  }
 0x1d1   :  { %2903 = vmatpush2.bf16.msra.mxu0 %v4694_v26  ;;  %v4741_v26 = vld [vmem:[#allocation7 + $0xc4] ss:$8 sps:$4 sm:$0xff]  }
 0x1d2   :  { %2944 = vmatpush2.bf16.msra.mxu1 %v4697_v30  ;;  %2904 = vmatprep.subr.bf16.mxu0 %v4702_v31  ;;  %v4783_v30 = vld [vmem:[#allocation7 + $0x1e4] ss:$8 sps:$4 sm:$0xff]   ;;  %v4739_v31 = vld [vmem:[#allocation7 + $0xc0] ss:$8 sps:$4 sm:$0xff]  }
 0x1d3   :  { %2945 = vmatprep.subr.bf16.mxu1 %v4705_v20  ;;  %v4781_v20 = vld [vmem:[#allocation7 + $0x1e0] ss:$8 sps:$4 sm:$0xff]  }
 0x1d5   :  { %2905 = vmatpush2.bf16.msra.mxu0 %v4700_v21  ;;  %v4744_v21 = vld [vmem:[#allocation7 + $0xb4] ss:$8 sps:$4 sm:$0xff]  }
 0x1d6   :  { %2946 = vmatpush2.bf16.msra.mxu1 %v4703_v10  ;;  %3360 = vmatprep.subr.bf16.mxu0 %v4708_v34  ;;  %v4786_v10 = vld [vmem:[#allocation7 + $0x1d4] ss:$8 sps:$4 sm:$0xff]   ;;  %v4742_v34 = vld [vmem:[#allocation7 + $0xb0] ss:$8 sps:$4 sm:$0xff]  }
 0x1d8   :  { %v5108_v42 = vpop.f32.mrf.mxu0  ;;  %2907 = vmatmul.mubr.bf16.vlgmr.msra.gmra.mxu0 %v5071_v39  ;;  %v4717_v39 = vld [vmem:[#allocation7 + $0x44] ss:$8 sps:$4 sm:$0xff]  }
 0x1d9   :  { %v5110_v43 = vpop.f32.mrf.mxu1  ;;  %2948 = vmatmul.mubr.bf16.vlgmr.msra.gmra.mxu1 %v5073_v41  ;;  %3361 = vmatpush1.bf16.msra.mxu0 %v4706_v36  ;;  %v4756_v41 = vld [vmem:[#allocation7 + $0x174] ss:$8 sps:$4 sm:$0xff]   ;;  %v4747_v36 = vld [vmem:[#allocation7 + $0xa4] ss:$8 sps:$4 sm:$0xff]  }
 0x1da   :  { %v2664_v32 = vpop.f32.mrf.mxu0  ;;  %3362 = vmatprep.subr.bf16.mxu0 %v4711_v38  ;;  %3401 = vmatprep.subr.bf16.mxu1 %v4756_v41  ;;  %v4789_v38 = vld [vmem:[#allocation7 + $0x1c4] ss:$8 sps:$4 sm:$0xff]  }
 0x1db   :  { %v2705_v45 = vpop.f32.mrf.mxu1  ;;  %v2665_v27 = vadd.f32 %v2664_v32, %v2624_v44  ;;  %3402 = vmatpush1.bf16.msra.mxu1 %v4754_v56  ;;  %v4745_v44 = vld [vmem:[#allocation7 + $0xa0] ss:$8 sps:$4 sm:$0xff]   ;;  %v2663_v32 = vadd.f32 %v5108_v42, %v5102_v33  ;;  %v538_v33 = vsub.s32 3, %v5079_v47  ;;  %v4818_v42 = vld [vmem:[#allocation6] sm:$0xf] }
 0x1dc   :  { %v2666_v46 = vpop.f32.mrf.mxu0  ;;  %3403 = vmatprep.subr.bf16.mxu1 %v4759_v28  ;;  %v4795_v41 = vld [vmem:[#allocation7 + $0x1a4] ss:$8 sps:$4 sm:$0xff]   ;;  %v4793_v28 = vld [vmem:[#allocation7 + $0x1a0] ss:$8 sps:$4 sm:$0xff]  }
 0x1dd   :  { %v2707_v48 = vpop.f32.mrf.mxu1  ;;  %v2706_v50 = vadd.f32 %v2705_v45, %v2665_v27  ;;  %3363 = vmatpush1.bf16.msra.mxu0 %v4709_v29  ;;  %v4787_v29 = vld [vmem:[#allocation7 + $0x1c0] ss:$8 sps:$4 sm:$0xff]   ;;  %v4750_v45 = vld [vmem:[#allocation7 + $0x94] ss:$8 sps:$4 sm:$0xff]   ;;  %v4748_v27 = vld [vmem:[#allocation7 + $0x90] ss:$8 sps:$4 sm:$0xff]  }
 0x1de   :  { %v2667_v53 = vpop.f32.mrf.mxu0  ;;  %3364 = vmatprep.subr.bf16.mxu0 %v4714_v15  ;;  %v4792_v15 = vld [vmem:[#allocation7 + $0x1b4] ss:$8 sps:$4 sm:$0xff]   ;;  %v4790_v46 = vld [vmem:[#allocation7 + $0x1b0] ss:$8 sps:$4 sm:$0xff]   ;;  %v2704_v48 = vadd.f32 %v5110_v43, %v2663_v32 }
 0x1df   :  { %v2708_v54 = vpop.f32.mrf.mxu1  ;;  %v2957_v57 = vmax.f32 %v2706_v50, 0.0  ;;  %3404 = vmatpush1.bf16.msra.mxu1 %v4757_v49  ;;  %v4753_v50 = vld [vmem:[#allocation7 + $0x84] ss:$8 sps:$4 sm:$0xff]   ;;  %v534_v53 = vsub.s32 2, %v5079_v47 }
 0x1e0   :  { %3405 = vmatprep.subr.bf16.mxu1 %v4762_v61  ;;  %v2956_v54 = vmax.f32 %v2704_v48, 0.0  ;;  %v4798_v61 = vld [vmem:[#allocation7 + $0x194] ss:$8 sps:$4 sm:$0xff]  }
 0x1e1   :  { %v2961_v59 = vpack.c.bf16 %v2957_v57, %v2957_v57  ;;  %3365 = vmatpush1.bf16.msra.mxu0 %v4712_v51  ;;  %v4751_v51 = vld [vmem:[#allocation7 + $0x80] ss:$8 sps:$4 sm:$0xff]   ;;  %v539_v57 = vrot.slane %v4818_v42, %v538_v33 }
 0x1e2   :  { %3366 = vmatprep.subr.bf16.mxu0 %v4717_v39  ;;  %v535_v39 = vrot.slane %v4818_v42, %v534_v53  ;;  %v2960_v56 = vpack.c.bf16 %v2956_v54, %v2956_v54 }
 0x1e3   :  { %3392 = vmatprep.mubr.bf16.mxu0 %v2961_v59  ;;  %3406 = vmatpush1.bf16.msra.mxu1 %v4760_v63 }
 0x1e4   :  { %3407 = vmatprep.subr.bf16.mxu1 %v4765_v1 }
 0x1e5   :  { %3367 = vmatpush1.bf16.msra.mxu0 %v4715_v60 }
 0x1e6   :  { %3368 = vmatprep.subr.bf16.mxu0 %v4720_v52 }
 0x1e7   :  { %3408 = vmatpush1.bf16.msra.mxu1 %v4763_v3 }
 0x1e8   :  { %3409 = vmatprep.subr.bf16.mxu1 %v4768_v5 }
 0x1e9   :  { %3369 = vmatpush1.bf16.msra.mxu0 %v4718_v62 }
 0x1ea   :  { %3370 = vmatprep.subr.bf16.mxu0 %v4723_v0  ;;  %v4796_v0 = vld [vmem:[#allocation7 + $0x190] ss:$8 sps:$4 sm:$0xff]  }
 0x1eb   :  { %3410 = vmatpush1.bf16.msra.mxu1 %v4766_v7  ;;  %v4799_v7 = vld [vmem:[#allocation7 + $0x180] ss:$8 sps:$4 sm:$0xff]  }
 0x1ec   :  { %3411 = vmatprep.subr.bf16.mxu1 %v4771_v12 }
 0x1ed   :  { %3371 = vmatpush1.bf16.msra.mxu0 %v4721_v2 }
 0x1ee   :  { %3372 = vmatprep.subr.bf16.mxu0 %v4726_v4 }
 0x1ef   :  { %3412 = vmatpush1.bf16.msra.mxu1 %v4769_v8 }
 0x1f0   :  { %3413 = vmatprep.subr.bf16.mxu1 %v4774_v14 }
 0x1f1   :  { %3373 = vmatpush1.bf16.msra.mxu0 %v4724_v6  ;;  %v4801_v6 = vld [vmem:[#allocation7 + $0x184] ss:$8 sps:$4 sm:$0xff]  }
 0x1f2   :  { %3374 = vmatprep.subr.bf16.mxu0 %v4729_v11 }
 0x1f3   :  { %3414 = vmatpush1.bf16.msra.mxu1 %v4772_v17 }
 0x1f4   :  { %3415 = vmatprep.subr.bf16.mxu1 %v4777_v19 }
 0x1f5   :  { %3375 = vmatpush1.bf16.msra.mxu0 %v4727_v13 }
 0x1f6   :  { %3376 = vmatprep.subr.bf16.mxu0 %v4732_v9 }
 0x1f7   :  { %3416 = vmatpush1.bf16.msra.mxu1 %v4775_v23  ;;  %v4803_v23 = vld [vmem:[#allocation10 + $0x38] sm:$0xff]  }
 0x1f8   :  { %3417 = vmatprep.subr.bf16.mxu1 %v4780_v40  ;;  %v4805_v40 = vld [vmem:[#allocation10 + $0x30] sm:$0xff]  }
 0x1f9   :  { %3377 = vmatpush2.bf16.msra.mxu0 %v4730_v16 }
 0x1fa   :  { %3378 = vmatprep.subr.bf16.mxu0 %v4735_v18 }
 0x1fb   :  { %3418 = vmatpush2.bf16.msra.mxu1 %v4778_v25  ;;  %v4807_v25 = vld [vmem:[#allocation10 + $0x28] sm:$0xff]  }
 0x1fc   :  { %3419 = vmatprep.subr.bf16.mxu1 %v4783_v30  ;;  %v4809_v30 = vld [vmem:[#allocation10 + $0x20] sm:$0xff]  }
 0x1fd   :  { %3379 = vmatpush2.bf16.msra.mxu0 %v4733_v22  ;;  %v4802_v22 = vld [vmem:[#allocation10 + $0x78] sm:$0xff]  }
 0x1fe   :  { %3380 = vmatprep.subr.bf16.mxu0 %v4738_v37  ;;  %v4804_v37 = vld [vmem:[#allocation10 + $0x70] sm:$0xff]  }
 0x1ff   :  { %3420 = vmatpush2.bf16.msra.mxu1 %v4781_v20  ;;  %v4811_v20 = vld [vmem:[#allocation10 + $0x18] sm:$0xff]  }
 0x200   :  { %3421 = vmatprep.subr.bf16.mxu1 %v4786_v10  ;;  %v4813_v10 = vld [vmem:[#allocation10 + $0x10] sm:$0xff]  }
 0x201   :  { %3381 = vmatpush2.bf16.msra.mxu0 %v4736_v24  ;;  %v4806_v24 = vld [vmem:[#allocation10 + $0x68] sm:$0xff]  }
 0x202   :  { %3382 = vmatprep.subr.bf16.mxu0 %v4741_v26  ;;  %v4808_v26 = vld [vmem:[#allocation10 + $0x60] sm:$0xff]  }
 0x203   :  { %3422 = vmatpush2.bf16.msra.mxu1 %v4784_v35 }
 0x204   :  { %3423 = vmatprep.subr.bf16.mxu1 %v4789_v38 }
 0x205   :  { %3383 = vmatpush2.bf16.msra.mxu0 %v4739_v31  ;;  %v4810_v31 = vld [vmem:[#allocation10 + $0x58] sm:$0xff]  }
 0x206   :  { %3384 = vmatprep.subr.bf16.mxu0 %v4744_v21  ;;  %v4812_v21 = vld [vmem:[#allocation10 + $0x50] sm:$0xff]  }
 0x207   :  { %3424 = vmatpush2.bf16.msra.mxu1 %v4787_v29 }
 0x208   :  { %3425 = vmatprep.subr.bf16.mxu1 %v4792_v15 }
 0x209   :  { %3385 = vmatpush2.bf16.msra.mxu0 %v4742_v34 }
 0x20a   :  { %3386 = vmatprep.subr.bf16.mxu0 %v4747_v36 }
 0x20b   :  { %3426 = vmatpush2.bf16.msra.mxu1 %v4790_v46 }
 0x20c   :  { %3427 = vmatprep.subr.bf16.mxu1 %v4795_v41 }
 0x20d   :  { %3387 = vmatpush2.bf16.msra.mxu0 %v4745_v44 }
 0x20e   :  { %3388 = vmatprep.subr.bf16.mxu0 %v4750_v45 }
 0x20f   :  { %3428 = vmatpush2.bf16.msra.mxu1 %v4793_v28  ;;  %v4814_v28 = vld [vmem:[#allocation10 + $0x48] sm:$0xff]  }
 0x210   :  { %3429 = vmatprep.subr.bf16.mxu1 %v4798_v61 }
 0x211   :  { %3389 = vmatpush2.bf16.msra.mxu0 %v4748_v27 }
 0x212   :  { %3390 = vmatprep.subr.bf16.mxu0 %v4753_v50 }
 0x213   :  { %3430 = vmatpush2.bf16.msra.mxu1 %v4796_v0 }
 0x214   :  { %3431 = vmatprep.subr.bf16.mxu1 %v4801_v6 }
 0x215   :  { %3391 = vmatpush2.bf16.msra.mxu0 %v4751_v51 }
 0x216   :  { %4095 = vmatprep.subr.bf16.mxu0 %v4802_v22 }
 0x217   :  { %3432 = vmatpush2.bf16.msra.mxu1 %v4799_v7 }
 0x218   :  { %v2744_v43 = vpop.f32.mrf.mxu0  ;;  %3393 = vmatmul.mubr.bf16.vlgmr.msra.gmra.mxu0 %v2960_v56 }
 0x219   :  { %v2785_v59 = vpop.f32.mrf.mxu1  ;;  %v2745_v60 = vadd.f32 %v2744_v43, %v535_v39  ;;  %4096 = vmatpush3.bf16.msra.mxu0 %v4803_v23  ;;  %v4815_v43 = vld [vmem:[#allocation10 + $0x8] sm:$0xff]  }
 0x21a   :  { %v2746_v49 = vpop.f32.mrf.mxu0  ;;  %4097 = vmatprep.subr.bf16.mxu0 %v4804_v37 }
 0x21b   :  { %v2787_v52 = vpop.f32.mrf.mxu1  ;;  %v2786_v62 = vadd.f32 %v2785_v59, %v2745_v60  ;;  %v2747_v63 = vadd.f32 %v2746_v49, %v539_v57  ;;  %v4816_v59 = vld [vmem:[#allocation10 + $0x40] sm:$0xff]   ;;  %v3028_v49 = vld [vmem:[#allocation9] sm:$0x3] }
 0x21c   :  { %v2748_v1 = vpop.f32.mrf.mxu0  ;;  %v4817_v60 = vld [vmem:[#allocation10] sm:$0xff]   ;;  %v3037_v61 = vrot.slane %v3028_v49, %v530_v58 }
 0x21d   :  { %v2789_v2 = vpop.f32.mrf.mxu1  ;;  %v2788_v3 = vadd.f32 %v2787_v52, %v2747_v63  ;;  %4098 = vmatpush3.bf16.msra.mxu0 %v4805_v40  ;;  %v3033_v52 = vrot.slane %v3028_v49, %v526_v55 }
 0x21e   :  { %v2749_v4 = vpop.f32.mrf.mxu0  ;;  %4099 = vmatprep.subr.bf16.mxu0 %v4806_v24 }
 0x21f   :  { %v2790_v5 = vpop.f32.mrf.mxu1 }
 0x221   :  { %4100 = vmatpush3.bf16.msra.mxu0 %v4807_v25 }
 0x222   :  { %4101 = vmatprep.subr.bf16.mxu0 %v4808_v26 }
 0x225   :  { %4102 = vmatpush3.bf16.msra.mxu0 %v4809_v30 }
 0x226   :  { %4103 = vmatprep.subr.bf16.mxu0 %v4810_v31 }
 0x229   :  { %4104 = vmatpush3.bf16.msra.mxu0 %v4811_v20 }
 0x22a   :  { %4105 = vmatprep.subr.bf16.mxu0 %v4812_v21 }
 0x22d   :  { %4106 = vmatpush3.bf16.msra.mxu0 %v4813_v10 }
 0x22e   :  { %4107 = vmatprep.subr.bf16.mxu0 %v4814_v28 }
 0x231   :  { %4108 = vmatpush3.bf16.msra.mxu0 %v4815_v43 }
 0x232   :  { %4109 = vmatprep.subr.bf16.mxu0 %v4816_v59 }
 0x235   :  { %4110 = vmatpush3.bf16.msra.mxu0 %v4817_v60 }
 0x258   :  { %v2826_v11 = vpop.f32.mrf.mxu0 }
 0x259   :  { %v2867_v12 = vpop.f32.mrf.mxu1  ;;  %v2827_v13 = vadd.f32 %v2826_v11, %v2786_v62 }
 0x25a   :  { %v2828_v8 = vpop.f32.mrf.mxu0 }
 0x25b   :  { %v2869_v9 = vpop.f32.mrf.mxu1  ;;  %v2868_v14 = vadd.f32 %v2867_v12, %v2827_v13  ;;  %v2829_v34 = vadd.f32 %v2828_v8, %v2788_v3  ;;  %v4078_v8 = vld [vmem:[#allocation12] ss:$0 sm:$0xff] }
 0x25c   :  { %v2830_v16 = vpop.f32.mrf.mxu0 }
 0x25d   :  { %v2871_v17 = vpop.f32.mrf.mxu1  ;;  %v2870_v38 = vadd.f32 %v2869_v9, %v2829_v34 }
 0x25e   :  { %v2831_v18 = vpop.f32.mrf.mxu0 }
 0x25f   :  { %v2872_v19 = vpop.f32.mrf.mxu1 }
 0x298   :  { %v2908_v35 = vpop.f32.mrf.mxu0 }
 0x299   :  { %v2949_v36 = vpop.f32.mrf.mxu1  ;;  %v2909_v44 = vadd.f32 %v2908_v35, %v2868_v14 }
 0x29a   :  { %v2910_v29 = vpop.f32.mrf.mxu0 }
 0x29b   :  { %v2951_v32 = vpop.f32.mrf.mxu1  ;;  %v2950_v45 = vadd.f32 %v2949_v36, %v2909_v44  ;;  %v2911_v15 = vadd.f32 %v2910_v29, %v2870_v38 }
 0x29c   :  { %v2912_v27 = vpop.f32.mrf.mxu0 }
 0x29d   :  { %v2953_v46 = vpop.f32.mrf.mxu1  ;;  %v2952_v48 = vadd.f32 %v2951_v32, %v2911_v15  ;;  %v2958_v50 = vmax.f32 %v2950_v45, 0.0 }
 0x29e   :  { %v2913_v51 = vpop.f32.mrf.mxu0 }
 0x29f   :  { %v2954_v53 = vpop.f32.mrf.mxu1  ;;  %v2959_v54 = vmax.f32 %v2952_v48, 0.0  ;;  %v2962_v42 = vpack.c.bf16 %v2958_v50, %v2958_v50 }
 0x2a1   :  { %v2963_v33 = vpack.c.bf16 %v2959_v54, %v2959_v54 }
 0x2a3   :  { %3433 = vmatprep.mubr.bf16.mxu1 %v2963_v33 }
 0x2a4   :  { %3434 = vmatmul.mubr.bf16.vlgmr.msra.gmra.mxu1 %v2962_v42 }
 0x2d8   :  { %v3394_v39 = vpop.f32.mrf.mxu0 }
 0x2d9   :  { %v3395_v62 = vadd.f32 %v3394_v39, %v3033_v52 }
 0x2da   :  { %v3396_v56 = vpop.f32.mrf.mxu0 }
 0x2db   :  { %v3397_v0 = vadd.f32 %v3396_v56, %v3037_v61 }
 0x2dc   :  { %v3398_v41 = vpop.f32.mrf.mxu0 }
 0x2de   :  { %v3399_v57 = vpop.f32.mrf.mxu0 }
 0x364   :  { %v3435_v63 = vpop.f32.mrf.mxu1 }
 0x365   :  { %v3436_v1 = vadd.f32 %v3435_v63, %v3395_v62 }
 0x366   :  { %v3437_v2 = vpop.f32.mrf.mxu1 }
 0x367   :  { %v3438_v3 = vadd.f32 %v3437_v2, %v3397_v0  ;;  %v3442_v4 = vmax.f32 %v3436_v1, 0.0 }
 0x368   :  { %v3439_v5 = vpop.f32.mrf.mxu1 }
 0x369   :  { %v3443_v6 = vmax.f32 %v3438_v3, 0.0  ;;  %v3444_v12 = vpack.c.bf16 %v3442_v4, %v3442_v4 }
 0x36a   :  { %v3440_v7 = vpop.f32.mrf.mxu1 }
 0x36b   :  { %v3445_v11 = vpack.c.bf16 %v3443_v6, %v3443_v6 }
 0x36d   :  { %3613 = vmatprep.mubr.bf16.mxu0 %v3445_v11 }
 0x36e   :  { %3614 = vmatmul.mubr.bf16.vlgmr.msra.gmra.mxu0 %v3444_v12 }
 0x42e   :  { %v4111_v13 = vpop.f32.mrf.mxu0 }
 0x430   :  { %v4112_v55 = vpop.f32.mrf.mxu0 }
 0x431   :  { %v4113_v9 = vadd.f32 %v4112_v55, %v4111_v13 }
 0x432   :  { %v4114_v47 = vpop.f32.mrf.mxu0 }
 0x433   :  { %v3616_v58 = vadd.f32 %v4113_v9, %v4078_v8 }
 0x434   :  { %v4115_v14 = vpop.f32.mrf.mxu0 }
 0x435   :  { %3621 = vst [vmem:[%s5134_s7] sm:$0xff] %v3616_v58 }
 0x436   :  { %3626 = vsyncpa [#allocation3], 1 }
 0x437   :  { %3627 = vsyncpa [#allocation5], 1 }
 0x438   :  { %3628 = vsyncpa [#allocation8], 1 }
 0x439   :  { %3629 = vsyncpa [#allocation11], 1 }

</bundles_post_ra>
